<compile_context>
chip_gen: v5e
topology: v5e:2x2
jax: 0.10.0
libtpu: 0.0.40
codegen_flags: <defaults>
</compile_context>

<pallas_src>
import functools

import jax
import jax.numpy as jnp
import numpy as np
from jax.experimental import pallas as pl
from jax.experimental.pallas import tpu as pltpu


def _lstm_seq_kernel(T, L, H,
                     tok_ref,       # (T,) int32 SMEM scalar-prefetch tokens
                     emb_ref,       # (V, H)      embedding table (VMEM-resident)
                     w_ih_ref,      # (L, H, 4H)  W_ih^T per layer (gate order i,f,g,o)
                     w_hh_ref,      # (L, H, 4H)  W_hh^T per layer
                     b_z_ref,       # (L, 1, 4H)  b_ih + b_hh per layer
                     h0_ref,        # (L, 1, H)   initial h
                     c0_ref,        # (L, 1, H)   initial c
                     w_dec_ref,     # (H, O)      decoder W^T
                     b_dec_ref,     # (1, O)      decoder bias
                     out_ref,       # (T, O)      logits
                     h_out_ref,     # (L, 1, H)   final h
                     c_out_ref,     # (L, 1, H)   final c
                     x_seq,         # (T, H) VMEM scratch: gathered embeddings
                     h_seq):        # (T, H) VMEM scratch: final-layer h per step
    # 1) Embedding gather: dynamic-row reads from the resident table (no per-step DMA).
    for t in range(T):
        tok = tok_ref[t]
        x_seq[pl.ds(t, 1), :] = emb_ref[pl.ds(tok, 1), :]

    # 2) Hoisted layer-0 input projection over ALL timesteps: (T,H)@(H,4H) + bias.
    z0_all = jnp.dot(x_seq[...], w_ih_ref[0],
                     preferred_element_type=jnp.float32) + b_z_ref[0]      # (T, 4H)

    # Carried state kept in vregs; written back to HBM once at the end.
    hs = [h0_ref[l] for l in range(L)]                                     # (1, H) each
    cs = [c0_ref[l] for l in range(L)]

    # 3) Serial recurrence over time (static unroll; T and L are tiny).
    for t in range(T):
        x = None
        for l in range(L):
            if l == 0:
                # Input contribution precomputed in z0_all (bias already folded in).
                z = z0_all[t:t + 1, :] + jnp.dot(
                    hs[0], w_hh_ref[0], preferred_element_type=jnp.float32)
            else:
                z = (jnp.dot(x, w_ih_ref[l], preferred_element_type=jnp.float32)
                     + jnp.dot(hs[l], w_hh_ref[l], preferred_element_type=jnp.float32)
                     + b_z_ref[l])                                         # (1, 4H)
            # Full-vreg transcendentals, then slice gates (i, f, o from sigmoid; g from tanh).
            sig = jax.nn.sigmoid(z)
            tnh = jnp.tanh(z)
            i_g = sig[:, 0:H]
            f_g = sig[:, H:2 * H]
            g_g = tnh[:, 2 * H:3 * H]
            o_g = sig[:, 3 * H:4 * H]
            c_new = f_g * cs[l] + i_g * g_g
            h_new = o_g * jnp.tanh(c_new)
            cs[l] = c_new
            hs[l] = h_new
            x = h_new
        h_seq[pl.ds(t, 1), :] = x                                          # stash for decoder

    # 4) Batched decoder: one (T,H)@(H,O) matmul + bias, single block store.
    out_ref[...] = (jnp.dot(h_seq[...], w_dec_ref[...],
                            preferred_element_type=jnp.float32) + b_dec_ref[...])

    # 5) Final state writeback.
    for l in range(L):
        h_out_ref[l] = hs[l]
        c_out_ref[l] = cs[l]


def prepare_params(params):
    """One-time layout prep (hoisted out of the hot path)."""
    emb, w_ih, w_hh, b_ih, b_hh, w_dec, b_dec = params
    L, fourH, H = w_ih.shape
    w_ih_t = jnp.transpose(w_ih, (0, 2, 1))                   # (L, H, 4H)
    w_hh_t = jnp.transpose(w_hh, (0, 2, 1))                   # (L, H, 4H)
    b_z = (b_ih + b_hh).reshape(L, 1, fourH)                  # (L, 1, 4H)
    w_dec_t = w_dec.T                                         # (H, O)
    b_dec_r = b_dec.reshape(1, -1)                            # (1, O)
    return emb, w_ih_t, w_hh_t, b_z, w_dec_t, b_dec_r


def lstm_forward_pallas(tokens, hidden, prepped):
    """Run T LSTM steps (T applications of the module's forward, feeding hidden through).

    Returns (logits (T, O), (h (L,1,H), c (L,1,H))).
    """
    emb, w_ih_t, w_hh_t, b_z, w_dec_t, b_dec_r = prepped
    h0, c0 = hidden
    L, _, H = h0.shape
    V = emb.shape[0]
    O = w_dec_t.shape[1]
    T = int(tokens.shape[0])

    kernel = functools.partial(_lstm_seq_kernel, T, L, H)

    grid_spec = pltpu.PrefetchScalarGridSpec(
        num_scalar_prefetch=1,
        grid=(1,),   # single grid step; whole recurrence unrolled in-kernel
        in_specs=[
            # Everything constant-indexed -> DMA'd once, VMEM-resident.
            pl.BlockSpec((V, H), lambda i, toks: (0, 0)),
            pl.BlockSpec((L, H, 4 * H), lambda i, toks: (0, 0, 0)),
            pl.BlockSpec((L, H, 4 * H), lambda i, toks: (0, 0, 0)),
            pl.BlockSpec((L, 1, 4 * H), lambda i, toks: (0, 0, 0)),
            pl.BlockSpec((L, 1, H), lambda i, toks: (0, 0, 0)),
            pl.BlockSpec((L, 1, H), lambda i, toks: (0, 0, 0)),
            pl.BlockSpec((H, O), lambda i, toks: (0, 0)),
            pl.BlockSpec((1, O), lambda i, toks: (0, 0)),
        ],
        out_specs=[
            pl.BlockSpec((T, O), lambda i, toks: (0, 0)),
            pl.BlockSpec((L, 1, H), lambda i, toks: (0, 0, 0)),
            pl.BlockSpec((L, 1, H), lambda i, toks: (0, 0, 0)),
        ],
        scratch_shapes=[
            pltpu.VMEM((T, H), jnp.float32),   # gathered embeddings
            pltpu.VMEM((T, H), jnp.float32),   # final-layer h per step
        ],
    )

    out, h_new, c_new = pl.pallas_call(
        kernel,
        grid_spec=grid_spec,
        out_shape=(jax.ShapeDtypeStruct((T, O), jnp.float32),
                   jax.ShapeDtypeStruct((L, 1, H), jnp.float32),
                   jax.ShapeDtypeStruct((L, 1, H), jnp.float32)),
        compiler_params=pltpu.CompilerParams(
            dimension_semantics=("arbitrary",)),
    )(tokens, emb, w_ih_t, w_hh_t, b_z, h0, c0, w_dec_t, b_dec_r)
    return out, (h_new, c_new)


def lstm_step_pallas(token, hidden, prepped):
    """Exact analogue of the module's forward(input, hidden): one token -> (logits (1,O), hidden)."""
    out, hidden = lstm_forward_pallas(token.reshape(1), hidden, prepped)
    return out, hidden


def lstm_forward_ref(tokens, h0, c0, params):
    """Pure-JAX reference mirroring PyTorch nn.LSTM semantics (gate order i, f, g, o)."""
    emb, w_ih, w_hh, b_ih, b_hh, w_dec, b_dec = params
    L, _, H = h0.shape
    h = [h0[l] for l in range(L)]
    c = [c0[l] for l in range(L)]
    outs = []
    for t in range(tokens.shape[0]):
        x = emb[tokens[t]][None, :]                           # (1, H)
        for l in range(L):
            z = (x @ w_ih[l].T + b_ih[l][None, :]
                 + h[l] @ w_hh[l].T + b_hh[l][None, :])       # (1, 4H)
            i_g = jax.nn.sigmoid(z[:, 0:H])
            f_g = jax.nn.sigmoid(z[:, H:2 * H])
            g_g = jnp.tanh(z[:, 2 * H:3 * H])
            o_g = jax.nn.sigmoid(z[:, 3 * H:4 * H])
            c[l] = f_g * c[l] + i_g * g_g
            h[l] = o_g * jnp.tanh(c[l])
            x = h[l]
        outs.append(x @ w_dec.T + b_dec[None, :])
    return jnp.concatenate(outs, axis=0), jnp.stack(h), jnp.stack(c)


def init_params(key, input_size, hidden_size, output_size, n_layers):
    """Deterministic synthetic init matching PyTorch parameter shapes."""
    V, H, O, L = input_size, hidden_size, output_size, n_layers
    ks = jax.random.split(key, 7)
    bound = 1.0 / np.sqrt(H)
    emb = jax.random.normal(ks[0], (V, H), jnp.float32)                           # Embedding
    w_ih = jax.random.uniform(ks[1], (L, 4 * H, H), jnp.float32, -bound, bound)   # LSTM W_ih_l
    w_hh = jax.random.uniform(ks[2], (L, 4 * H, H), jnp.float32, -bound, bound)   # LSTM W_hh_l
    b_ih = jax.random.uniform(ks[3], (L, 4 * H), jnp.float32, -bound, bound)
    b_hh = jax.random.uniform(ks[4], (L, 4 * H), jnp.float32, -bound, bound)
    w_dec = jax.random.uniform(ks[5], (O, H), jnp.float32, -bound, bound)         # Linear
    b_dec = jax.random.uniform(ks[6], (O,), jnp.float32, -bound, bound)
    return (emb, w_ih, w_hh, b_ih, b_hh, w_dec, b_dec)


if __name__ == "__main__":
    input_size, hidden_size, output_size, n_layers = 32, 32, 32, 2
    T = 8

    key = jax.random.PRNGKey(0)
    pkey, hkey, ckey, tkey = jax.random.split(key, 4)
    params = init_params(pkey, input_size, hidden_size, output_size, n_layers)
    prepped = prepare_params(params)   # one-time layout prep (not in the hot loop)

    tokens = jax.random.randint(tkey, (T,), 0, input_size, dtype=jnp.int32)
    # init_hidden() would be zeros; use small nonzero (h, c) to exercise the recurrence.
    h0 = 0.1 * jax.random.normal(hkey, (n_layers, 1, hidden_size), jnp.float32)
    c0 = 0.1 * jax.random.normal(ckey, (n_layers, 1, hidden_size), jnp.float32)

    # Sequence of T steps in a single pallas_call / single grid step.
    out, (h_new, c_new) = lstm_forward_pallas(tokens, (h0, c0), prepped)
    out, h_new, c_new = jax.block_until_ready((out, h_new, c_new))

    out_ref, h_ref_, c_ref_ = lstm_forward_ref(tokens, h0, c0, params)
    assert out.shape == (T, output_size)
    assert h_new.shape == (n_layers, 1, hidden_size)
    assert c_new.shape == (n_layers, 1, hidden_size)
    np.testing.assert_allclose(np.asarray(out), np.asarray(out_ref), rtol=1e-5, atol=1e-5)
    np.testing.assert_allclose(np.asarray(h_new), np.asarray(h_ref_), rtol=1e-5, atol=1e-5)
    np.testing.assert_allclose(np.asarray(c_new), np.asarray(c_ref_), rtol=1e-5, atol=1e-5)

    # Single-step path matching the module's forward(input, hidden) signature.
    out1, (h1, c1) = lstm_step_pallas(tokens[0], (h0, c0), prepped)
    out1, h1, c1 = jax.block_until_ready((out1, h1, c1))
    out1_ref, h1_ref, c1_ref = lstm_forward_ref(tokens[:1], h0, c0, params)
    np.testing.assert_allclose(np.asarray(out1), np.asarray(out1_ref), rtol=1e-5, atol=1e-5)
    np.testing.assert_allclose(np.asarray(h1), np.asarray(h1_ref), rtol=1e-5, atol=1e-5)
    np.testing.assert_allclose(np.asarray(c1), np.asarray(c1_ref), rtol=1e-5, atol=1e-5)

    print("KERNEL_OK")
</pallas_src>

<mosaic_0001>
module attributes {stable_mosaic.version = 11 : i64} {
  func.func @_lstm_seq_kernel(%arg0: i32, %arg1: memref<8xi32, #tpu.memory_space<smem>>, %arg2: memref<32x32xf32, #tpu.memory_space<vmem>>, %arg3: memref<2x32x128xf32, #tpu.memory_space<vmem>>, %arg4: memref<2x32x128xf32, #tpu.memory_space<vmem>>, %arg5: memref<2x1x128xf32, #tpu.memory_space<vmem>>, %arg6: memref<2x1x32xf32, #tpu.memory_space<vmem>>, %arg7: memref<2x1x32xf32, #tpu.memory_space<vmem>>, %arg8: memref<32x32xf32, #tpu.memory_space<vmem>>, %arg9: memref<1x32xf32, #tpu.memory_space<vmem>>, %arg10: memref<8x32xf32, #tpu.memory_space<vmem>>, %arg11: memref<2x1x32xf32, #tpu.memory_space<vmem>>, %arg12: memref<2x1x32xf32, #tpu.memory_space<vmem>>, %arg13: memref<8x32xf32, #tpu.memory_space<vmem>>, %arg14: memref<8x32xf32, #tpu.memory_space<vmem>>) attributes {dimension_semantics = [#tpu.dimension_semantics<arbitrary>], iteration_bounds = array<i64: 1>, scalar_prefetch = 1 : i64, scratch_operands = 2 : i64, tpu.core_type = #tpu.core_type<tc>, window_params = [{pipeline_mode = #tpu.pipeline_mode<synchronous>, transform_indices = @transform_0, window_bounds = array<i64: 32, 32>}, {pipeline_mode = #tpu.pipeline_mode<synchronous>, transform_indices = @transform_1, window_bounds = array<i64: 2, 32, 128>}, {pipeline_mode = #tpu.pipeline_mode<synchronous>, transform_indices = @transform_2, window_bounds = array<i64: 2, 32, 128>}, {pipeline_mode = #tpu.pipeline_mode<synchronous>, transform_indices = @transform_3, window_bounds = array<i64: 2, 1, 128>}, {pipeline_mode = #tpu.pipeline_mode<synchronous>, transform_indices = @transform_4, window_bounds = array<i64: 2, 1, 32>}, {pipeline_mode = #tpu.pipeline_mode<synchronous>, transform_indices = @transform_5, window_bounds = array<i64: 2, 1, 32>}, {pipeline_mode = #tpu.pipeline_mode<synchronous>, transform_indices = @transform_6, window_bounds = array<i64: 32, 32>}, {pipeline_mode = #tpu.pipeline_mode<synchronous>, transform_indices = @transform_7, window_bounds = array<i64: 1, 32>}, {pipeline_mode = #tpu.pipeline_mode<synchronous>, transform_indices = @transform_8, window_bounds = array<i64: 8, 32>}, {pipeline_mode = #tpu.pipeline_mode<synchronous>, transform_indices = @transform_9, window_bounds = array<i64: 2, 1, 32>}, {pipeline_mode = #tpu.pipeline_mode<synchronous>, transform_indices = @transform_10, window_bounds = array<i64: 2, 1, 32>}]} {
    %c0 = arith.constant 0 : index
    %0 = memref.load %arg1[%c0] : memref<8xi32, #tpu.memory_space<smem>>
    %1 = arith.index_cast %0 : i32 to index
    %c0_0 = arith.constant 0 : index
    %2 = vector.load %arg2[%1, %c0_0] : memref<32x32xf32, #tpu.memory_space<vmem>>, vector<1x32xf32>
    %c0_1 = arith.constant 0 : index
    %c0_2 = arith.constant 0 : index
    %3 = vector.load %arg13[%c0_1, %c0_2] : memref<8x32xf32, #tpu.memory_space<vmem>>, vector<1x32xf32>
    tpu.vector_store %arg13[%c0_1, %c0_2], %2 {strides = array<i32>} : memref<8x32xf32, #tpu.memory_space<vmem>>, vector<1x32xf32>,
    %c1 = arith.constant 1 : index
    %4 = memref.load %arg1[%c1] : memref<8xi32, #tpu.memory_space<smem>>
    %5 = arith.index_cast %4 : i32 to index
    %c0_3 = arith.constant 0 : index
    %6 = vector.load %arg2[%5, %c0_3] : memref<32x32xf32, #tpu.memory_space<vmem>>, vector<1x32xf32>
    %c1_4 = arith.constant 1 : index
    %c0_5 = arith.constant 0 : index
    %7 = vector.load %arg13[%c1_4, %c0_5] : memref<8x32xf32, #tpu.memory_space<vmem>>, vector<1x32xf32>
    tpu.vector_store %arg13[%c1_4, %c0_5], %6 {strides = array<i32>} : memref<8x32xf32, #tpu.memory_space<vmem>>, vector<1x32xf32>,
    %c2 = arith.constant 2 : index
    %8 = memref.load %arg1[%c2] : memref<8xi32, #tpu.memory_space<smem>>
    %9 = arith.index_cast %8 : i32 to index
    %c0_6 = arith.constant 0 : index
    %10 = vector.load %arg2[%9, %c0_6] : memref<32x32xf32, #tpu.memory_space<vmem>>, vector<1x32xf32>
    %c2_7 = arith.constant 2 : index
    %c0_8 = arith.constant 0 : index
    %11 = vector.load %arg13[%c2_7, %c0_8] : memref<8x32xf32, #tpu.memory_space<vmem>>, vector<1x32xf32>
    tpu.vector_store %arg13[%c2_7, %c0_8], %10 {strides = array<i32>} : memref<8x32xf32, #tpu.memory_space<vmem>>, vector<1x32xf32>,
    %c3 = arith.constant 3 : index
    %12 = memref.load %arg1[%c3] : memref<8xi32, #tpu.memory_space<smem>>
    %13 = arith.index_cast %12 : i32 to index
    %c0_9 = arith.constant 0 : index
    %14 = vector.load %arg2[%13, %c0_9] : memref<32x32xf32, #tpu.memory_space<vmem>>, vector<1x32xf32>
    %c3_10 = arith.constant 3 : index
    %c0_11 = arith.constant 0 : index
    %15 = vector.load %arg13[%c3_10, %c0_11] : memref<8x32xf32, #tpu.memory_space<vmem>>, vector<1x32xf32>
    tpu.vector_store %arg13[%c3_10, %c0_11], %14 {strides = array<i32>} : memref<8x32xf32, #tpu.memory_space<vmem>>, vector<1x32xf32>,
    %c4 = arith.constant 4 : index
    %16 = memref.load %arg1[%c4] : memref<8xi32, #tpu.memory_space<smem>>
    %17 = arith.index_cast %16 : i32 to index
    %c0_12 = arith.constant 0 : index
    %18 = vector.load %arg2[%17, %c0_12] : memref<32x32xf32, #tpu.memory_space<vmem>>, vector<1x32xf32>
    %c4_13 = arith.constant 4 : index
    %c0_14 = arith.constant 0 : index
    %19 = vector.load %arg13[%c4_13, %c0_14] : memref<8x32xf32, #tpu.memory_space<vmem>>, vector<1x32xf32>
    tpu.vector_store %arg13[%c4_13, %c0_14], %18 {strides = array<i32>} : memref<8x32xf32, #tpu.memory_space<vmem>>, vector<1x32xf32>,
    %c5 = arith.constant 5 : index
    %20 = memref.load %arg1[%c5] : memref<8xi32, #tpu.memory_space<smem>>
    %21 = arith.index_cast %20 : i32 to index
    %c0_15 = arith.constant 0 : index
    %22 = vector.load %arg2[%21, %c0_15] : memref<32x32xf32, #tpu.memory_space<vmem>>, vector<1x32xf32>
    %c5_16 = arith.constant 5 : index
    %c0_17 = arith.constant 0 : index
    %23 = vector.load %arg13[%c5_16, %c0_17] : memref<8x32xf32, #tpu.memory_space<vmem>>, vector<1x32xf32>
    tpu.vector_store %arg13[%c5_16, %c0_17], %22 {strides = array<i32>} : memref<8x32xf32, #tpu.memory_space<vmem>>, vector<1x32xf32>,
    %c6 = arith.constant 6 : index
    %24 = memref.load %arg1[%c6] : memref<8xi32, #tpu.memory_space<smem>>
    %25 = arith.index_cast %24 : i32 to index
    %c0_18 = arith.constant 0 : index
    %26 = vector.load %arg2[%25, %c0_18] : memref<32x32xf32, #tpu.memory_space<vmem>>, vector<1x32xf32>
    %c6_19 = arith.constant 6 : index
    %c0_20 = arith.constant 0 : index
    %27 = vector.load %arg13[%c6_19, %c0_20] : memref<8x32xf32, #tpu.memory_space<vmem>>, vector<1x32xf32>
    tpu.vector_store %arg13[%c6_19, %c0_20], %26 {strides = array<i32>} : memref<8x32xf32, #tpu.memory_space<vmem>>, vector<1x32xf32>,
    %c7 = arith.constant 7 : index
    %28 = memref.load %arg1[%c7] : memref<8xi32, #tpu.memory_space<smem>>
    %29 = arith.index_cast %28 : i32 to index
    %c0_21 = arith.constant 0 : index
    %30 = vector.load %arg2[%29, %c0_21] : memref<32x32xf32, #tpu.memory_space<vmem>>, vector<1x32xf32>
    %c7_22 = arith.constant 7 : index
    %c0_23 = arith.constant 0 : index
    %31 = vector.load %arg13[%c7_22, %c0_23] : memref<8x32xf32, #tpu.memory_space<vmem>>, vector<1x32xf32>
    tpu.vector_store %arg13[%c7_22, %c0_23], %30 {strides = array<i32>} : memref<8x32xf32, #tpu.memory_space<vmem>>, vector<1x32xf32>,
    %c0_24 = arith.constant 0 : index
    %c0_25 = arith.constant 0 : index
    %32 = vector.load %arg13[%c0_24, %c0_25] : memref<8x32xf32, #tpu.memory_space<vmem>>, vector<8x32xf32>
    %c0_26 = arith.constant 0 : index
    %c0_27 = arith.constant 0 : index
    %c0_28 = arith.constant 0 : index
    %33 = vector.load %arg3[%c0_26, %c0_27, %c0_28] : memref<2x32x128xf32, #tpu.memory_space<vmem>>, vector<1x32x128xf32>
    %34 = vector.shape_cast %33 : vector<1x32x128xf32> to vector<32x128xf32>
    %cst = arith.constant dense<0.000000e+00> : vector<8x128xf32>
    %35 = tpu.matmul %32, %34, %cst {dimension_numbers = #tpu.dot_dimension_numbers<[1], [0], [0], [1], [0, 0, 1, 1], [], []>} : vector<8x32xf32>, vector<32x128xf32>, vector<8x128xf32> -> vector<8x128xf32>
    %c0_29 = arith.constant 0 : index
    %c0_30 = arith.constant 0 : index
    %c0_31 = arith.constant 0 : index
    %36 = vector.load %arg5[%c0_29, %c0_30, %c0_31] : memref<2x1x128xf32, #tpu.memory_space<vmem>>, vector<1x1x128xf32>
    %37 = vector.shape_cast %36 : vector<1x1x128xf32> to vector<1x128xf32>
    %38 = vector.broadcast %37 : vector<1x128xf32> to vector<8x128xf32>
    %39 = arith.addf %35, %38 : vector<8x128xf32>
    %c0_32 = arith.constant 0 : index
    %c0_33 = arith.constant 0 : index
    %c0_34 = arith.constant 0 : index
    %40 = vector.load %arg6[%c0_32, %c0_33, %c0_34] : memref<2x1x32xf32, #tpu.memory_space<vmem>>, vector<1x1x32xf32>
    %41 = vector.shape_cast %40 : vector<1x1x32xf32> to vector<1x32xf32>
    %c1_35 = arith.constant 1 : index
    %c0_36 = arith.constant 0 : index
    %c0_37 = arith.constant 0 : index
    %42 = vector.load %arg6[%c1_35, %c0_36, %c0_37] : memref<2x1x32xf32, #tpu.memory_space<vmem>>, vector<1x1x32xf32>
    %43 = vector.shape_cast %42 : vector<1x1x32xf32> to vector<1x32xf32>
    %c0_38 = arith.constant 0 : index
    %c0_39 = arith.constant 0 : index
    %c0_40 = arith.constant 0 : index
    %44 = vector.load %arg7[%c0_38, %c0_39, %c0_40] : memref<2x1x32xf32, #tpu.memory_space<vmem>>, vector<1x1x32xf32>
    %45 = vector.shape_cast %44 : vector<1x1x32xf32> to vector<1x32xf32>
    %c1_41 = arith.constant 1 : index
    %c0_42 = arith.constant 0 : index
    %c0_43 = arith.constant 0 : index
    %46 = vector.load %arg7[%c1_41, %c0_42, %c0_43] : memref<2x1x32xf32, #tpu.memory_space<vmem>>, vector<1x1x32xf32>
    %47 = vector.shape_cast %46 : vector<1x1x32xf32> to vector<1x32xf32>
    %48 = vector.extract_strided_slice %39 {offsets = [0, 0], sizes = [1, 128], strides = [1, 1]} : vector<8x128xf32> to vector<1x128xf32>
    %c0_44 = arith.constant 0 : index
    %c0_45 = arith.constant 0 : index
    %c0_46 = arith.constant 0 : index
    %49 = vector.load %arg4[%c0_44, %c0_45, %c0_46] : memref<2x32x128xf32, #tpu.memory_space<vmem>>, vector<1x32x128xf32>
    %50 = vector.shape_cast %49 : vector<1x32x128xf32> to vector<32x128xf32>
    %cst_47 = arith.constant dense<0.000000e+00> : vector<1x128xf32>
    %51 = tpu.matmul %41, %50, %cst_47 {dimension_numbers = #tpu.dot_dimension_numbers<[1], [0], [0], [1], [0, 0, 1, 1], [], []>} : vector<1x32xf32>, vector<32x128xf32>, vector<1x128xf32> -> vector<1x128xf32>
    %52 = arith.addf %48, %51 : vector<1x128xf32>
    %53 = arith.negf %52 : vector<1x128xf32>
    %54 = math.exp %53 : vector<1x128xf32>
    %cst_48 = arith.constant 1.000000e+00 : f32
    %55 = vector.broadcast %cst_48 : f32 to vector<1x128xf32>
    %56 = arith.addf %55, %54 : vector<1x128xf32>
    %57 = arith.divf %55, %56 : vector<1x128xf32>
    %58 = math.tanh %52 : vector<1x128xf32>
    %59 = vector.extract_strided_slice %57 {offsets = [0, 0], sizes = [1, 32], strides = [1, 1]} : vector<1x128xf32> to vector<1x32xf32>
    %60 = vector.extract_strided_slice %57 {offsets = [0, 32], sizes = [1, 32], strides = [1, 1]} : vector<1x128xf32> to vector<1x32xf32>
    %61 = vector.extract_strided_slice %58 {offsets = [0, 64], sizes = [1, 32], strides = [1, 1]} : vector<1x128xf32> to vector<1x32xf32>
    %62 = vector.extract_strided_slice %57 {offsets = [0, 96], sizes = [1, 32], strides = [1, 1]} : vector<1x128xf32> to vector<1x32xf32>
    %63 = arith.mulf %60, %45 : vector<1x32xf32>
    %64 = arith.mulf %59, %61 : vector<1x32xf32>
    %65 = arith.addf %63, %64 : vector<1x32xf32>
    %66 = math.tanh %65 : vector<1x32xf32>
    %67 = arith.mulf %62, %66 : vector<1x32xf32>
    %c1_49 = arith.constant 1 : index
    %c0_50 = arith.constant 0 : index
    %c0_51 = arith.constant 0 : index
    %68 = vector.load %arg3[%c1_49, %c0_50, %c0_51] : memref<2x32x128xf32, #tpu.memory_space<vmem>>, vector<1x32x128xf32>
    %69 = vector.shape_cast %68 : vector<1x32x128xf32> to vector<32x128xf32>
    %cst_52 = arith.constant dense<0.000000e+00> : vector<1x128xf32>
    %70 = tpu.matmul %67, %69, %cst_52 {dimension_numbers = #tpu.dot_dimension_numbers<[1], [0], [0], [1], [0, 0, 1, 1], [], []>} : vector<1x32xf32>, vector<32x128xf32>, vector<1x128xf32> -> vector<1x128xf32>
    %c1_53 = arith.constant 1 : index
    %c0_54 = arith.constant 0 : index
    %c0_55 = arith.constant 0 : index
    %71 = vector.load %arg4[%c1_53, %c0_54, %c0_55] : memref<2x32x128xf32, #tpu.memory_space<vmem>>, vector<1x32x128xf32>
    %72 = vector.shape_cast %71 : vector<1x32x128xf32> to vector<32x128xf32>
    %cst_56 = arith.constant dense<0.000000e+00> : vector<1x128xf32>
    %73 = tpu.matmul %43, %72, %cst_56 {dimension_numbers = #tpu.dot_dimension_numbers<[1], [0], [0], [1], [0, 0, 1, 1], [], []>} : vector<1x32xf32>, vector<32x128xf32>, vector<1x128xf32> -> vector<1x128xf32>
    %74 = arith.addf %70, %73 : vector<1x128xf32>
    %c1_57 = arith.constant 1 : index
    %c0_58 = arith.constant 0 : index
    %c0_59 = arith.constant 0 : index
    %75 = vector.load %arg5[%c1_57, %c0_58, %c0_59] : memref<2x1x128xf32, #tpu.memory_space<vmem>>, vector<1x1x128xf32>
    %76 = vector.shape_cast %75 : vector<1x1x128xf32> to vector<1x128xf32>
    %77 = arith.addf %74, %76 : vector<1x128xf32>
    %78 = arith.negf %77 : vector<1x128xf32>
    %79 = math.exp %78 : vector<1x128xf32>
    %cst_60 = arith.constant 1.000000e+00 : f32
    %80 = vector.broadcast %cst_60 : f32 to vector<1x128xf32>
    %81 = arith.addf %80, %79 : vector<1x128xf32>
    %82 = arith.divf %80, %81 : vector<1x128xf32>
    %83 = math.tanh %77 : vector<1x128xf32>
    %84 = vector.extract_strided_slice %82 {offsets = [0, 0], sizes = [1, 32], strides = [1, 1]} : vector<1x128xf32> to vector<1x32xf32>
    %85 = vector.extract_strided_slice %82 {offsets = [0, 32], sizes = [1, 32], strides = [1, 1]} : vector<1x128xf32> to vector<1x32xf32>
    %86 = vector.extract_strided_slice %83 {offsets = [0, 64], sizes = [1, 32], strides = [1, 1]} : vector<1x128xf32> to vector<1x32xf32>
    %87 = vector.extract_strided_slice %82 {offsets = [0, 96], sizes = [1, 32], strides = [1, 1]} : vector<1x128xf32> to vector<1x32xf32>
    %88 = arith.mulf %85, %47 : vector<1x32xf32>
    %89 = arith.mulf %84, %86 : vector<1x32xf32>
    %90 = arith.addf %88, %89 : vector<1x32xf32>
    %91 = math.tanh %90 : vector<1x32xf32>
    %92 = arith.mulf %87, %91 : vector<1x32xf32>
    %c0_61 = arith.constant 0 : index
    %c0_62 = arith.constant 0 : index
    %93 = vector.load %arg14[%c0_61, %c0_62] : memref<8x32xf32, #tpu.memory_space<vmem>>, vector<1x32xf32>
    tpu.vector_store %arg14[%c0_61, %c0_62], %92 {strides = array<i32>} : memref<8x32xf32, #tpu.memory_space<vmem>>, vector<1x32xf32>,
    %94 = vector.extract_strided_slice %39 {offsets = [1, 0], sizes = [1, 128], strides = [1, 1]} : vector<8x128xf32> to vector<1x128xf32>
    %c0_63 = arith.constant 0 : index
    %c0_64 = arith.constant 0 : index
    %c0_65 = arith.constant 0 : index
    %95 = vector.load %arg4[%c0_63, %c0_64, %c0_65] : memref<2x32x128xf32, #tpu.memory_space<vmem>>, vector<1x32x128xf32>
    %96 = vector.shape_cast %95 : vector<1x32x128xf32> to vector<32x128xf32>
    %cst_66 = arith.constant dense<0.000000e+00> : vector<1x128xf32>
    %97 = tpu.matmul %67, %96, %cst_66 {dimension_numbers = #tpu.dot_dimension_numbers<[1], [0], [0], [1], [0, 0, 1, 1], [], []>} : vector<1x32xf32>, vector<32x128xf32>, vector<1x128xf32> -> vector<1x128xf32>
    %98 = arith.addf %94, %97 : vector<1x128xf32>
    %99 = arith.negf %98 : vector<1x128xf32>
    %100 = math.exp %99 : vector<1x128xf32>
    %cst_67 = arith.constant 1.000000e+00 : f32
    %101 = vector.broadcast %cst_67 : f32 to vector<1x128xf32>
    %102 = arith.addf %101, %100 : vector<1x128xf32>
    %103 = arith.divf %101, %102 : vector<1x128xf32>
    %104 = math.tanh %98 : vector<1x128xf32>
    %105 = vector.extract_strided_slice %103 {offsets = [0, 0], sizes = [1, 32], strides = [1, 1]} : vector<1x128xf32> to vector<1x32xf32>
    %106 = vector.extract_strided_slice %103 {offsets = [0, 32], sizes = [1, 32], strides = [1, 1]} : vector<1x128xf32> to vector<1x32xf32>
    %107 = vector.extract_strided_slice %104 {offsets = [0, 64], sizes = [1, 32], strides = [1, 1]} : vector<1x128xf32> to vector<1x32xf32>
    %108 = vector.extract_strided_slice %103 {offsets = [0, 96], sizes = [1, 32], strides = [1, 1]} : vector<1x128xf32> to vector<1x32xf32>
    %109 = arith.mulf %106, %65 : vector<1x32xf32>
    %110 = arith.mulf %105, %107 : vector<1x32xf32>
    %111 = arith.addf %109, %110 : vector<1x32xf32>
    %112 = math.tanh %111 : vector<1x32xf32>
    %113 = arith.mulf %108, %112 : vector<1x32xf32>
    %c1_68 = arith.constant 1 : index
    %c0_69 = arith.constant 0 : index
    %c0_70 = arith.constant 0 : index
    %114 = vector.load %arg3[%c1_68, %c0_69, %c0_70] : memref<2x32x128xf32, #tpu.memory_space<vmem>>, vector<1x32x128xf32>
    %115 = vector.shape_cast %114 : vector<1x32x128xf32> to vector<32x128xf32>
    %cst_71 = arith.constant dense<0.000000e+00> : vector<1x128xf32>
    %116 = tpu.matmul %113, %115, %cst_71 {dimension_numbers = #tpu.dot_dimension_numbers<[1], [0], [0], [1], [0, 0, 1, 1], [], []>} : vector<1x32xf32>, vector<32x128xf32>, vector<1x128xf32> -> vector<1x128xf32>
    %c1_72 = arith.constant 1 : index
    %c0_73 = arith.constant 0 : index
    %c0_74 = arith.constant 0 : index
    %117 = vector.load %arg4[%c1_72, %c0_73, %c0_74] : memref<2x32x128xf32, #tpu.memory_space<vmem>>, vector<1x32x128xf32>
    %118 = vector.shape_cast %117 : vector<1x32x128xf32> to vector<32x128xf32>
    %cst_75 = arith.constant dense<0.000000e+00> : vector<1x128xf32>
    %119 = tpu.matmul %92, %118, %cst_75 {dimension_numbers = #tpu.dot_dimension_numbers<[1], [0], [0], [1], [0, 0, 1, 1], [], []>} : vector<1x32xf32>, vector<32x128xf32>, vector<1x128xf32> -> vector<1x128xf32>
    %120 = arith.addf %116, %119 : vector<1x128xf32>
    %c1_76 = arith.constant 1 : index
    %c0_77 = arith.constant 0 : index
    %c0_78 = arith.constant 0 : index
    %121 = vector.load %arg5[%c1_76, %c0_77, %c0_78] : memref<2x1x128xf32, #tpu.memory_space<vmem>>, vector<1x1x128xf32>
    %122 = vector.shape_cast %121 : vector<1x1x128xf32> to vector<1x128xf32>
    %123 = arith.addf %120, %122 : vector<1x128xf32>
    %124 = arith.negf %123 : vector<1x128xf32>
    %125 = math.exp %124 : vector<1x128xf32>
    %cst_79 = arith.constant 1.000000e+00 : f32
    %126 = vector.broadcast %cst_79 : f32 to vector<1x128xf32>
    %127 = arith.addf %126, %125 : vector<1x128xf32>
    %128 = arith.divf %126, %127 : vector<1x128xf32>
    %129 = math.tanh %123 : vector<1x128xf32>
    %130 = vector.extract_strided_slice %128 {offsets = [0, 0], sizes = [1, 32], strides = [1, 1]} : vector<1x128xf32> to vector<1x32xf32>
    %131 = vector.extract_strided_slice %128 {offsets = [0, 32], sizes = [1, 32], strides = [1, 1]} : vector<1x128xf32> to vector<1x32xf32>
    %132 = vector.extract_strided_slice %129 {offsets = [0, 64], sizes = [1, 32], strides = [1, 1]} : vector<1x128xf32> to vector<1x32xf32>
    %133 = vector.extract_strided_slice %128 {offsets = [0, 96], sizes = [1, 32], strides = [1, 1]} : vector<1x128xf32> to vector<1x32xf32>
    %134 = arith.mulf %131, %90 : vector<1x32xf32>
    %135 = arith.mulf %130, %132 : vector<1x32xf32>
    %136 = arith.addf %134, %135 : vector<1x32xf32>
    %137 = math.tanh %136 : vector<1x32xf32>
    %138 = arith.mulf %133, %137 : vector<1x32xf32>
    %c1_80 = arith.constant 1 : index
    %c0_81 = arith.constant 0 : index
    %139 = vector.load %arg14[%c1_80, %c0_81] : memref<8x32xf32, #tpu.memory_space<vmem>>, vector<1x32xf32>
    tpu.vector_store %arg14[%c1_80, %c0_81], %138 {strides = array<i32>} : memref<8x32xf32, #tpu.memory_space<vmem>>, vector<1x32xf32>,
    %140 = vector.extract_strided_slice %39 {offsets = [2, 0], sizes = [1, 128], strides = [1, 1]} : vector<8x128xf32> to vector<1x128xf32>
    %c0_82 = arith.constant 0 : index
    %c0_83 = arith.constant 0 : index
    %c0_84 = arith.constant 0 : index
    %141 = vector.load %arg4[%c0_82, %c0_83, %c0_84] : memref<2x32x128xf32, #tpu.memory_space<vmem>>, vector<1x32x128xf32>
    %142 = vector.shape_cast %141 : vector<1x32x128xf32> to vector<32x128xf32>
    %cst_85 = arith.constant dense<0.000000e+00> : vector<1x128xf32>
    %143 = tpu.matmul %113, %142, %cst_85 {dimension_numbers = #tpu.dot_dimension_numbers<[1], [0], [0], [1], [0, 0, 1, 1], [], []>} : vector<1x32xf32>, vector<32x128xf32>, vector<1x128xf32> -> vector<1x128xf32>
    %144 = arith.addf %140, %143 : vector<1x128xf32>
    %145 = arith.negf %144 : vector<1x128xf32>
    %146 = math.exp %145 : vector<1x128xf32>
    %cst_86 = arith.constant 1.000000e+00 : f32
    %147 = vector.broadcast %cst_86 : f32 to vector<1x128xf32>
    %148 = arith.addf %147, %146 : vector<1x128xf32>
    %149 = arith.divf %147, %148 : vector<1x128xf32>
    %150 = math.tanh %144 : vector<1x128xf32>
    %151 = vector.extract_strided_slice %149 {offsets = [0, 0], sizes = [1, 32], strides = [1, 1]} : vector<1x128xf32> to vector<1x32xf32>
    %152 = vector.extract_strided_slice %149 {offsets = [0, 32], sizes = [1, 32], strides = [1, 1]} : vector<1x128xf32> to vector<1x32xf32>
    %153 = vector.extract_strided_slice %150 {offsets = [0, 64], sizes = [1, 32], strides = [1, 1]} : vector<1x128xf32> to vector<1x32xf32>
    %154 = vector.extract_strided_slice %149 {offsets = [0, 96], sizes = [1, 32], strides = [1, 1]} : vector<1x128xf32> to vector<1x32xf32>
    %155 = arith.mulf %152, %111 : vector<1x32xf32>
    %156 = arith.mulf %151, %153 : vector<1x32xf32>
    %157 = arith.addf %155, %156 : vector<1x32xf32>
    %158 = math.tanh %157 : vector<1x32xf32>
    %159 = arith.mulf %154, %158 : vector<1x32xf32>
    %c1_87 = arith.constant 1 : index
    %c0_88 = arith.constant 0 : index
    %c0_89 = arith.constant 0 : index
    %160 = vector.load %arg3[%c1_87, %c0_88, %c0_89] : memref<2x32x128xf32, #tpu.memory_space<vmem>>, vector<1x32x128xf32>
    %161 = vector.shape_cast %160 : vector<1x32x128xf32> to vector<32x128xf32>
    %cst_90 = arith.constant dense<0.000000e+00> : vector<1x128xf32>
    %162 = tpu.matmul %159, %161, %cst_90 {dimension_numbers = #tpu.dot_dimension_numbers<[1], [0], [0], [1], [0, 0, 1, 1], [], []>} : vector<1x32xf32>, vector<32x128xf32>, vector<1x128xf32> -> vector<1x128xf32>
    %c1_91 = arith.constant 1 : index
    %c0_92 = arith.constant 0 : index
    %c0_93 = arith.constant 0 : index
    %163 = vector.load %arg4[%c1_91, %c0_92, %c0_93] : memref<2x32x128xf32, #tpu.memory_space<vmem>>, vector<1x32x128xf32>
    %164 = vector.shape_cast %163 : vector<1x32x128xf32> to vector<32x128xf32>
    %cst_94 = arith.constant dense<0.000000e+00> : vector<1x128xf32>
    %165 = tpu.matmul %138, %164, %cst_94 {dimension_numbers = #tpu.dot_dimension_numbers<[1], [0], [0], [1], [0, 0, 1, 1], [], []>} : vector<1x32xf32>, vector<32x128xf32>, vector<1x128xf32> -> vector<1x128xf32>
    %166 = arith.addf %162, %165 : vector<1x128xf32>
    %c1_95 = arith.constant 1 : index
    %c0_96 = arith.constant 0 : index
    %c0_97 = arith.constant 0 : index
    %167 = vector.load %arg5[%c1_95, %c0_96, %c0_97] : memref<2x1x128xf32, #tpu.memory_space<vmem>>, vector<1x1x128xf32>
    %168 = vector.shape_cast %167 : vector<1x1x128xf32> to vector<1x128xf32>
    %169 = arith.addf %166, %168 : vector<1x128xf32>
    %170 = arith.negf %169 : vector<1x128xf32>
    %171 = math.exp %170 : vector<1x128xf32>
    %cst_98 = arith.constant 1.000000e+00 : f32
    %172 = vector.broadcast %cst_98 : f32 to vector<1x128xf32>
    %173 = arith.addf %172, %171 : vector<1x128xf32>
    %174 = arith.divf %172, %173 : vector<1x128xf32>
    %175 = math.tanh %169 : vector<1x128xf32>
    %176 = vector.extract_strided_slice %174 {offsets = [0, 0], sizes = [1, 32], strides = [1, 1]} : vector<1x128xf32> to vector<1x32xf32>
    %177 = vector.extract_strided_slice %174 {offsets = [0, 32], sizes = [1, 32], strides = [1, 1]} : vector<1x128xf32> to vector<1x32xf32>
    %178 = vector.extract_strided_slice %175 {offsets = [0, 64], sizes = [1, 32], strides = [1, 1]} : vector<1x128xf32> to vector<1x32xf32>
    %179 = vector.extract_strided_slice %174 {offsets = [0, 96], sizes = [1, 32], strides = [1, 1]} : vector<1x128xf32> to vector<1x32xf32>
    %180 = arith.mulf %177, %136 : vector<1x32xf32>
    %181 = arith.mulf %176, %178 : vector<1x32xf32>
    %182 = arith.addf %180, %181 : vector<1x32xf32>
    %183 = math.tanh %182 : vector<1x32xf32>
    %184 = arith.mulf %179, %183 : vector<1x32xf32>
    %c2_99 = arith.constant 2 : index
    %c0_100 = arith.constant 0 : index
    %185 = vector.load %arg14[%c2_99, %c0_100] : memref<8x32xf32, #tpu.memory_space<vmem>>, vector<1x32xf32>
    tpu.vector_store %arg14[%c2_99, %c0_100], %184 {strides = array<i32>} : memref<8x32xf32, #tpu.memory_space<vmem>>, vector<1x32xf32>,
    %186 = vector.extract_strided_slice %39 {offsets = [3, 0], sizes = [1, 128], strides = [1, 1]} : vector<8x128xf32> to vector<1x128xf32>
    %c0_101 = arith.constant 0 : index
    %c0_102 = arith.constant 0 : index
    %c0_103 = arith.constant 0 : index
    %187 = vector.load %arg4[%c0_101, %c0_102, %c0_103] : memref<2x32x128xf32, #tpu.memory_space<vmem>>, vector<1x32x128xf32>
    %188 = vector.shape_cast %187 : vector<1x32x128xf32> to vector<32x128xf32>
    %cst_104 = arith.constant dense<0.000000e+00> : vector<1x128xf32>
    %189 = tpu.matmul %159, %188, %cst_104 {dimension_numbers = #tpu.dot_dimension_numbers<[1], [0], [0], [1], [0, 0, 1, 1], [], []>} : vector<1x32xf32>, vector<32x128xf32>, vector<1x128xf32> -> vector<1x128xf32>
    %190 = arith.addf %186, %189 : vector<1x128xf32>
    %191 = arith.negf %190 : vector<1x128xf32>
    %192 = math.exp %191 : vector<1x128xf32>
    %cst_105 = arith.constant 1.000000e+00 : f32
    %193 = vector.broadcast %cst_105 : f32 to vector<1x128xf32>
    %194 = arith.addf %193, %192 : vector<1x128xf32>
    %195 = arith.divf %193, %194 : vector<1x128xf32>
    %196 = math.tanh %190 : vector<1x128xf32>
    %197 = vector.extract_strided_slice %195 {offsets = [0, 0], sizes = [1, 32], strides = [1, 1]} : vector<1x128xf32> to vector<1x32xf32>
    %198 = vector.extract_strided_slice %195 {offsets = [0, 32], sizes = [1, 32], strides = [1, 1]} : vector<1x128xf32> to vector<1x32xf32>
    %199 = vector.extract_strided_slice %196 {offsets = [0, 64], sizes = [1, 32], strides = [1, 1]} : vector<1x128xf32> to vector<1x32xf32>
    %200 = vector.extract_strided_slice %195 {offsets = [0, 96], sizes = [1, 32], strides = [1, 1]} : vector<1x128xf32> to vector<1x32xf32>
    %201 = arith.mulf %198, %157 : vector<1x32xf32>
    %202 = arith.mulf %197, %199 : vector<1x32xf32>
    %203 = arith.addf %201, %202 : vector<1x32xf32>
    %204 = math.tanh %203 : vector<1x32xf32>
    %205 = arith.mulf %200, %204 : vector<1x32xf32>
    %c1_106 = arith.constant 1 : index
    %c0_107 = arith.constant 0 : index
    %c0_108 = arith.constant 0 : index
    %206 = vector.load %arg3[%c1_106, %c0_107, %c0_108] : memref<2x32x128xf32, #tpu.memory_space<vmem>>, vector<1x32x128xf32>
    %207 = vector.shape_cast %206 : vector<1x32x128xf32> to vector<32x128xf32>
    %cst_109 = arith.constant dense<0.000000e+00> : vector<1x128xf32>
    %208 = tpu.matmul %205, %207, %cst_109 {dimension_numbers = #tpu.dot_dimension_numbers<[1], [0], [0], [1], [0, 0, 1, 1], [], []>} : vector<1x32xf32>, vector<32x128xf32>, vector<1x128xf32> -> vector<1x128xf32>
    %c1_110 = arith.constant 1 : index
    %c0_111 = arith.constant 0 : index
    %c0_112 = arith.constant 0 : index
    %209 = vector.load %arg4[%c1_110, %c0_111, %c0_112] : memref<2x32x128xf32, #tpu.memory_space<vmem>>, vector<1x32x128xf32>
    %210 = vector.shape_cast %209 : vector<1x32x128xf32> to vector<32x128xf32>
    %cst_113 = arith.constant dense<0.000000e+00> : vector<1x128xf32>
    %211 = tpu.matmul %184, %210, %cst_113 {dimension_numbers = #tpu.dot_dimension_numbers<[1], [0], [0], [1], [0, 0, 1, 1], [], []>} : vector<1x32xf32>, vector<32x128xf32>, vector<1x128xf32> -> vector<1x128xf32>
    %212 = arith.addf %208, %211 : vector<1x128xf32>
    %c1_114 = arith.constant 1 : index
    %c0_115 = arith.constant 0 : index
    %c0_116 = arith.constant 0 : index
    %213 = vector.load %arg5[%c1_114, %c0_115, %c0_116] : memref<2x1x128xf32, #tpu.memory_space<vmem>>, vector<1x1x128xf32>
    %214 = vector.shape_cast %213 : vector<1x1x128xf32> to vector<1x128xf32>
    %215 = arith.addf %212, %214 : vector<1x128xf32>
    %216 = arith.negf %215 : vector<1x128xf32>
    %217 = math.exp %216 : vector<1x128xf32>
    %cst_117 = arith.constant 1.000000e+00 : f32
    %218 = vector.broadcast %cst_117 : f32 to vector<1x128xf32>
    %219 = arith.addf %218, %217 : vector<1x128xf32>
    %220 = arith.divf %218, %219 : vector<1x128xf32>
    %221 = math.tanh %215 : vector<1x128xf32>
    %222 = vector.extract_strided_slice %220 {offsets = [0, 0], sizes = [1, 32], strides = [1, 1]} : vector<1x128xf32> to vector<1x32xf32>
    %223 = vector.extract_strided_slice %220 {offsets = [0, 32], sizes = [1, 32], strides = [1, 1]} : vector<1x128xf32> to vector<1x32xf32>
    %224 = vector.extract_strided_slice %221 {offsets = [0, 64], sizes = [1, 32], strides = [1, 1]} : vector<1x128xf32> to vector<1x32xf32>
    %225 = vector.extract_strided_slice %220 {offsets = [0, 96], sizes = [1, 32], strides = [1, 1]} : vector<1x128xf32> to vector<1x32xf32>
    %226 = arith.mulf %223, %182 : vector<1x32xf32>
    %227 = arith.mulf %222, %224 : vector<1x32xf32>
    %228 = arith.addf %226, %227 : vector<1x32xf32>
    %229 = math.tanh %228 : vector<1x32xf32>
    %230 = arith.mulf %225, %229 : vector<1x32xf32>
    %c3_118 = arith.constant 3 : index
    %c0_119 = arith.constant 0 : index
    %231 = vector.load %arg14[%c3_118, %c0_119] : memref<8x32xf32, #tpu.memory_space<vmem>>, vector<1x32xf32>
    tpu.vector_store %arg14[%c3_118, %c0_119], %230 {strides = array<i32>} : memref<8x32xf32, #tpu.memory_space<vmem>>, vector<1x32xf32>,
    %232 = vector.extract_strided_slice %39 {offsets = [4, 0], sizes = [1, 128], strides = [1, 1]} : vector<8x128xf32> to vector<1x128xf32>
    %c0_120 = arith.constant 0 : index
    %c0_121 = arith.constant 0 : index
    %c0_122 = arith.constant 0 : index
    %233 = vector.load %arg4[%c0_120, %c0_121, %c0_122] : memref<2x32x128xf32, #tpu.memory_space<vmem>>, vector<1x32x128xf32>
    %234 = vector.shape_cast %233 : vector<1x32x128xf32> to vector<32x128xf32>
    %cst_123 = arith.constant dense<0.000000e+00> : vector<1x128xf32>
    %235 = tpu.matmul %205, %234, %cst_123 {dimension_numbers = #tpu.dot_dimension_numbers<[1], [0], [0], [1], [0, 0, 1, 1], [], []>} : vector<1x32xf32>, vector<32x128xf32>, vector<1x128xf32> -> vector<1x128xf32>
    %236 = arith.addf %232, %235 : vector<1x128xf32>
    %237 = arith.negf %236 : vector<1x128xf32>
    %238 = math.exp %237 : vector<1x128xf32>
    %cst_124 = arith.constant 1.000000e+00 : f32
    %239 = vector.broadcast %cst_124 : f32 to vector<1x128xf32>
    %240 = arith.addf %239, %238 : vector<1x128xf32>
    %241 = arith.divf %239, %240 : vector<1x128xf32>
    %242 = math.tanh %236 : vector<1x128xf32>
    %243 = vector.extract_strided_slice %241 {offsets = [0, 0], sizes = [1, 32], strides = [1, 1]} : vector<1x128xf32> to vector<1x32xf32>
    %244 = vector.extract_strided_slice %241 {offsets = [0, 32], sizes = [1, 32], strides = [1, 1]} : vector<1x128xf32> to vector<1x32xf32>
    %245 = vector.extract_strided_slice %242 {offsets = [0, 64], sizes = [1, 32], strides = [1, 1]} : vector<1x128xf32> to vector<1x32xf32>
    %246 = vector.extract_strided_slice %241 {offsets = [0, 96], sizes = [1, 32], strides = [1, 1]} : vector<1x128xf32> to vector<1x32xf32>
    %247 = arith.mulf %244, %203 : vector<1x32xf32>
    %248 = arith.mulf %243, %245 : vector<1x32xf32>
    %249 = arith.addf %247, %248 : vector<1x32xf32>
    %250 = math.tanh %249 : vector<1x32xf32>
    %251 = arith.mulf %246, %250 : vector<1x32xf32>
    %c1_125 = arith.constant 1 : index
    %c0_126 = arith.constant 0 : index
    %c0_127 = arith.constant 0 : index
    %252 = vector.load %arg3[%c1_125, %c0_126, %c0_127] : memref<2x32x128xf32, #tpu.memory_space<vmem>>, vector<1x32x128xf32>
    %253 = vector.shape_cast %252 : vector<1x32x128xf32> to vector<32x128xf32>
    %cst_128 = arith.constant dense<0.000000e+00> : vector<1x128xf32>
    %254 = tpu.matmul %251, %253, %cst_128 {dimension_numbers = #tpu.dot_dimension_numbers<[1], [0], [0], [1], [0, 0, 1, 1], [], []>} : vector<1x32xf32>, vector<32x128xf32>, vector<1x128xf32> -> vector<1x128xf32>
    %c1_129 = arith.constant 1 : index
    %c0_130 = arith.constant 0 : index
    %c0_131 = arith.constant 0 : index
    %255 = vector.load %arg4[%c1_129, %c0_130, %c0_131] : memref<2x32x128xf32, #tpu.memory_space<vmem>>, vector<1x32x128xf32>
    %256 = vector.shape_cast %255 : vector<1x32x128xf32> to vector<32x128xf32>
    %cst_132 = arith.constant dense<0.000000e+00> : vector<1x128xf32>
    %257 = tpu.matmul %230, %256, %cst_132 {dimension_numbers = #tpu.dot_dimension_numbers<[1], [0], [0], [1], [0, 0, 1, 1], [], []>} : vector<1x32xf32>, vector<32x128xf32>, vector<1x128xf32> -> vector<1x128xf32>
    %258 = arith.addf %254, %257 : vector<1x128xf32>
    %c1_133 = arith.constant 1 : index
    %c0_134 = arith.constant 0 : index
    %c0_135 = arith.constant 0 : index
    %259 = vector.load %arg5[%c1_133, %c0_134, %c0_135] : memref<2x1x128xf32, #tpu.memory_space<vmem>>, vector<1x1x128xf32>
    %260 = vector.shape_cast %259 : vector<1x1x128xf32> to vector<1x128xf32>
    %261 = arith.addf %258, %260 : vector<1x128xf32>
    %262 = arith.negf %261 : vector<1x128xf32>
    %263 = math.exp %262 : vector<1x128xf32>
    %cst_136 = arith.constant 1.000000e+00 : f32
    %264 = vector.broadcast %cst_136 : f32 to vector<1x128xf32>
    %265 = arith.addf %264, %263 : vector<1x128xf32>
    %266 = arith.divf %264, %265 : vector<1x128xf32>
    %267 = math.tanh %261 : vector<1x128xf32>
    %268 = vector.extract_strided_slice %266 {offsets = [0, 0], sizes = [1, 32], strides = [1, 1]} : vector<1x128xf32> to vector<1x32xf32>
    %269 = vector.extract_strided_slice %266 {offsets = [0, 32], sizes = [1, 32], strides = [1, 1]} : vector<1x128xf32> to vector<1x32xf32>
    %270 = vector.extract_strided_slice %267 {offsets = [0, 64], sizes = [1, 32], strides = [1, 1]} : vector<1x128xf32> to vector<1x32xf32>
    %271 = vector.extract_strided_slice %266 {offsets = [0, 96], sizes = [1, 32], strides = [1, 1]} : vector<1x128xf32> to vector<1x32xf32>
    %272 = arith.mulf %269, %228 : vector<1x32xf32>
    %273 = arith.mulf %268, %270 : vector<1x32xf32>
    %274 = arith.addf %272, %273 : vector<1x32xf32>
    %275 = math.tanh %274 : vector<1x32xf32>
    %276 = arith.mulf %271, %275 : vector<1x32xf32>
    %c4_137 = arith.constant 4 : index
    %c0_138 = arith.constant 0 : index
    %277 = vector.load %arg14[%c4_137, %c0_138] : memref<8x32xf32, #tpu.memory_space<vmem>>, vector<1x32xf32>
    tpu.vector_store %arg14[%c4_137, %c0_138], %276 {strides = array<i32>} : memref<8x32xf32, #tpu.memory_space<vmem>>, vector<1x32xf32>,
    %278 = vector.extract_strided_slice %39 {offsets = [5, 0], sizes = [1, 128], strides = [1, 1]} : vector<8x128xf32> to vector<1x128xf32>
    %c0_139 = arith.constant 0 : index
    %c0_140 = arith.constant 0 : index
    %c0_141 = arith.constant 0 : index
    %279 = vector.load %arg4[%c0_139, %c0_140, %c0_141] : memref<2x32x128xf32, #tpu.memory_space<vmem>>, vector<1x32x128xf32>
    %280 = vector.shape_cast %279 : vector<1x32x128xf32> to vector<32x128xf32>
    %cst_142 = arith.constant dense<0.000000e+00> : vector<1x128xf32>
    %281 = tpu.matmul %251, %280, %cst_142 {dimension_numbers = #tpu.dot_dimension_numbers<[1], [0], [0], [1], [0, 0, 1, 1], [], []>} : vector<1x32xf32>, vector<32x128xf32>, vector<1x128xf32> -> vector<1x128xf32>
    %282 = arith.addf %278, %281 : vector<1x128xf32>
    %283 = arith.negf %282 : vector<1x128xf32>
    %284 = math.exp %283 : vector<1x128xf32>
    %cst_143 = arith.constant 1.000000e+00 : f32
    %285 = vector.broadcast %cst_143 : f32 to vector<1x128xf32>
    %286 = arith.addf %285, %284 : vector<1x128xf32>
    %287 = arith.divf %285, %286 : vector<1x128xf32>
    %288 = math.tanh %282 : vector<1x128xf32>
    %289 = vector.extract_strided_slice %287 {offsets = [0, 0], sizes = [1, 32], strides = [1, 1]} : vector<1x128xf32> to vector<1x32xf32>
    %290 = vector.extract_strided_slice %287 {offsets = [0, 32], sizes = [1, 32], strides = [1, 1]} : vector<1x128xf32> to vector<1x32xf32>
    %291 = vector.extract_strided_slice %288 {offsets = [0, 64], sizes = [1, 32], strides = [1, 1]} : vector<1x128xf32> to vector<1x32xf32>
    %292 = vector.extract_strided_slice %287 {offsets = [0, 96], sizes = [1, 32], strides = [1, 1]} : vector<1x128xf32> to vector<1x32xf32>
    %293 = arith.mulf %290, %249 : vector<1x32xf32>
    %294 = arith.mulf %289, %291 : vector<1x32xf32>
    %295 = arith.addf %293, %294 : vector<1x32xf32>
    %296 = math.tanh %295 : vector<1x32xf32>
    %297 = arith.mulf %292, %296 : vector<1x32xf32>
    %c1_144 = arith.constant 1 : index
    %c0_145 = arith.constant 0 : index
    %c0_146 = arith.constant 0 : index
    %298 = vector.load %arg3[%c1_144, %c0_145, %c0_146] : memref<2x32x128xf32, #tpu.memory_space<vmem>>, vector<1x32x128xf32>
    %299 = vector.shape_cast %298 : vector<1x32x128xf32> to vector<32x128xf32>
    %cst_147 = arith.constant dense<0.000000e+00> : vector<1x128xf32>
    %300 = tpu.matmul %297, %299, %cst_147 {dimension_numbers = #tpu.dot_dimension_numbers<[1], [0], [0], [1], [0, 0, 1, 1], [], []>} : vector<1x32xf32>, vector<32x128xf32>, vector<1x128xf32> -> vector<1x128xf32>
    %c1_148 = arith.constant 1 : index
    %c0_149 = arith.constant 0 : index
    %c0_150 = arith.constant 0 : index
    %301 = vector.load %arg4[%c1_148, %c0_149, %c0_150] : memref<2x32x128xf32, #tpu.memory_space<vmem>>, vector<1x32x128xf32>
    %302 = vector.shape_cast %301 : vector<1x32x128xf32> to vector<32x128xf32>
    %cst_151 = arith.constant dense<0.000000e+00> : vector<1x128xf32>
    %303 = tpu.matmul %276, %302, %cst_151 {dimension_numbers = #tpu.dot_dimension_numbers<[1], [0], [0], [1], [0, 0, 1, 1], [], []>} : vector<1x32xf32>, vector<32x128xf32>, vector<1x128xf32> -> vector<1x128xf32>
    %304 = arith.addf %300, %303 : vector<1x128xf32>
    %c1_152 = arith.constant 1 : index
    %c0_153 = arith.constant 0 : index
    %c0_154 = arith.constant 0 : index
    %305 = vector.load %arg5[%c1_152, %c0_153, %c0_154] : memref<2x1x128xf32, #tpu.memory_space<vmem>>, vector<1x1x128xf32>
    %306 = vector.shape_cast %305 : vector<1x1x128xf32> to vector<1x128xf32>
    %307 = arith.addf %304, %306 : vector<1x128xf32>
    %308 = arith.negf %307 : vector<1x128xf32>
    %309 = math.exp %308 : vector<1x128xf32>
    %cst_155 = arith.constant 1.000000e+00 : f32
    %310 = vector.broadcast %cst_155 : f32 to vector<1x128xf32>
    %311 = arith.addf %310, %309 : vector<1x128xf32>
    %312 = arith.divf %310, %311 : vector<1x128xf32>
    %313 = math.tanh %307 : vector<1x128xf32>
    %314 = vector.extract_strided_slice %312 {offsets = [0, 0], sizes = [1, 32], strides = [1, 1]} : vector<1x128xf32> to vector<1x32xf32>
    %315 = vector.extract_strided_slice %312 {offsets = [0, 32], sizes = [1, 32], strides = [1, 1]} : vector<1x128xf32> to vector<1x32xf32>
    %316 = vector.extract_strided_slice %313 {offsets = [0, 64], sizes = [1, 32], strides = [1, 1]} : vector<1x128xf32> to vector<1x32xf32>
    %317 = vector.extract_strided_slice %312 {offsets = [0, 96], sizes = [1, 32], strides = [1, 1]} : vector<1x128xf32> to vector<1x32xf32>
    %318 = arith.mulf %315, %274 : vector<1x32xf32>
    %319 = arith.mulf %314, %316 : vector<1x32xf32>
    %320 = arith.addf %318, %319 : vector<1x32xf32>
    %321 = math.tanh %320 : vector<1x32xf32>
    %322 = arith.mulf %317, %321 : vector<1x32xf32>
    %c5_156 = arith.constant 5 : index
    %c0_157 = arith.constant 0 : index
    %323 = vector.load %arg14[%c5_156, %c0_157] : memref<8x32xf32, #tpu.memory_space<vmem>>, vector<1x32xf32>
    tpu.vector_store %arg14[%c5_156, %c0_157], %322 {strides = array<i32>} : memref<8x32xf32, #tpu.memory_space<vmem>>, vector<1x32xf32>,
    %324 = vector.extract_strided_slice %39 {offsets = [6, 0], sizes = [1, 128], strides = [1, 1]} : vector<8x128xf32> to vector<1x128xf32>
    %c0_158 = arith.constant 0 : index
    %c0_159 = arith.constant 0 : index
    %c0_160 = arith.constant 0 : index
    %325 = vector.load %arg4[%c0_158, %c0_159, %c0_160] : memref<2x32x128xf32, #tpu.memory_space<vmem>>, vector<1x32x128xf32>
    %326 = vector.shape_cast %325 : vector<1x32x128xf32> to vector<32x128xf32>
    %cst_161 = arith.constant dense<0.000000e+00> : vector<1x128xf32>
    %327 = tpu.matmul %297, %326, %cst_161 {dimension_numbers = #tpu.dot_dimension_numbers<[1], [0], [0], [1], [0, 0, 1, 1], [], []>} : vector<1x32xf32>, vector<32x128xf32>, vector<1x128xf32> -> vector<1x128xf32>
    %328 = arith.addf %324, %327 : vector<1x128xf32>
    %329 = arith.negf %328 : vector<1x128xf32>
    %330 = math.exp %329 : vector<1x128xf32>
    %cst_162 = arith.constant 1.000000e+00 : f32
    %331 = vector.broadcast %cst_162 : f32 to vector<1x128xf32>
    %332 = arith.addf %331, %330 : vector<1x128xf32>
    %333 = arith.divf %331, %332 : vector<1x128xf32>
    %334 = math.tanh %328 : vector<1x128xf32>
    %335 = vector.extract_strided_slice %333 {offsets = [0, 0], sizes = [1, 32], strides = [1, 1]} : vector<1x128xf32> to vector<1x32xf32>
    %336 = vector.extract_strided_slice %333 {offsets = [0, 32], sizes = [1, 32], strides = [1, 1]} : vector<1x128xf32> to vector<1x32xf32>
    %337 = vector.extract_strided_slice %334 {offsets = [0, 64], sizes = [1, 32], strides = [1, 1]} : vector<1x128xf32> to vector<1x32xf32>
    %338 = vector.extract_strided_slice %333 {offsets = [0, 96], sizes = [1, 32], strides = [1, 1]} : vector<1x128xf32> to vector<1x32xf32>
    %339 = arith.mulf %336, %295 : vector<1x32xf32>
    %340 = arith.mulf %335, %337 : vector<1x32xf32>
    %341 = arith.addf %339, %340 : vector<1x32xf32>
    %342 = math.tanh %341 : vector<1x32xf32>
    %343 = arith.mulf %338, %342 : vector<1x32xf32>
    %c1_163 = arith.constant 1 : index
    %c0_164 = arith.constant 0 : index
    %c0_165 = arith.constant 0 : index
    %344 = vector.load %arg3[%c1_163, %c0_164, %c0_165] : memref<2x32x128xf32, #tpu.memory_space<vmem>>, vector<1x32x128xf32>
    %345 = vector.shape_cast %344 : vector<1x32x128xf32> to vector<32x128xf32>
    %cst_166 = arith.constant dense<0.000000e+00> : vector<1x128xf32>
    %346 = tpu.matmul %343, %345, %cst_166 {dimension_numbers = #tpu.dot_dimension_numbers<[1], [0], [0], [1], [0, 0, 1, 1], [], []>} : vector<1x32xf32>, vector<32x128xf32>, vector<1x128xf32> -> vector<1x128xf32>
    %c1_167 = arith.constant 1 : index
    %c0_168 = arith.constant 0 : index
    %c0_169 = arith.constant 0 : index
    %347 = vector.load %arg4[%c1_167, %c0_168, %c0_169] : memref<2x32x128xf32, #tpu.memory_space<vmem>>, vector<1x32x128xf32>
    %348 = vector.shape_cast %347 : vector<1x32x128xf32> to vector<32x128xf32>
    %cst_170 = arith.constant dense<0.000000e+00> : vector<1x128xf32>
    %349 = tpu.matmul %322, %348, %cst_170 {dimension_numbers = #tpu.dot_dimension_numbers<[1], [0], [0], [1], [0, 0, 1, 1], [], []>} : vector<1x32xf32>, vector<32x128xf32>, vector<1x128xf32> -> vector<1x128xf32>
    %350 = arith.addf %346, %349 : vector<1x128xf32>
    %c1_171 = arith.constant 1 : index
    %c0_172 = arith.constant 0 : index
    %c0_173 = arith.constant 0 : index
    %351 = vector.load %arg5[%c1_171, %c0_172, %c0_173] : memref<2x1x128xf32, #tpu.memory_space<vmem>>, vector<1x1x128xf32>
    %352 = vector.shape_cast %351 : vector<1x1x128xf32> to vector<1x128xf32>
    %353 = arith.addf %350, %352 : vector<1x128xf32>
    %354 = arith.negf %353 : vector<1x128xf32>
    %355 = math.exp %354 : vector<1x128xf32>
    %cst_174 = arith.constant 1.000000e+00 : f32
    %356 = vector.broadcast %cst_174 : f32 to vector<1x128xf32>
    %357 = arith.addf %356, %355 : vector<1x128xf32>
    %358 = arith.divf %356, %357 : vector<1x128xf32>
    %359 = math.tanh %353 : vector<1x128xf32>
    %360 = vector.extract_strided_slice %358 {offsets = [0, 0], sizes = [1, 32], strides = [1, 1]} : vector<1x128xf32> to vector<1x32xf32>
    %361 = vector.extract_strided_slice %358 {offsets = [0, 32], sizes = [1, 32], strides = [1, 1]} : vector<1x128xf32> to vector<1x32xf32>
    %362 = vector.extract_strided_slice %359 {offsets = [0, 64], sizes = [1, 32], strides = [1, 1]} : vector<1x128xf32> to vector<1x32xf32>
    %363 = vector.extract_strided_slice %358 {offsets = [0, 96], sizes = [1, 32], strides = [1, 1]} : vector<1x128xf32> to vector<1x32xf32>
    %364 = arith.mulf %361, %320 : vector<1x32xf32>
    %365 = arith.mulf %360, %362 : vector<1x32xf32>
    %366 = arith.addf %364, %365 : vector<1x32xf32>
    %367 = math.tanh %366 : vector<1x32xf32>
    %368 = arith.mulf %363, %367 : vector<1x32xf32>
    %c6_175 = arith.constant 6 : index
    %c0_176 = arith.constant 0 : index
    %369 = vector.load %arg14[%c6_175, %c0_176] : memref<8x32xf32, #tpu.memory_space<vmem>>, vector<1x32xf32>
    tpu.vector_store %arg14[%c6_175, %c0_176], %368 {strides = array<i32>} : memref<8x32xf32, #tpu.memory_space<vmem>>, vector<1x32xf32>,
    %370 = vector.extract_strided_slice %39 {offsets = [7, 0], sizes = [1, 128], strides = [1, 1]} : vector<8x128xf32> to vector<1x128xf32>
    %c0_177 = arith.constant 0 : index
    %c0_178 = arith.constant 0 : index
    %c0_179 = arith.constant 0 : index
    %371 = vector.load %arg4[%c0_177, %c0_178, %c0_179] : memref<2x32x128xf32, #tpu.memory_space<vmem>>, vector<1x32x128xf32>
    %372 = vector.shape_cast %371 : vector<1x32x128xf32> to vector<32x128xf32>
    %cst_180 = arith.constant dense<0.000000e+00> : vector<1x128xf32>
    %373 = tpu.matmul %343, %372, %cst_180 {dimension_numbers = #tpu.dot_dimension_numbers<[1], [0], [0], [1], [0, 0, 1, 1], [], []>} : vector<1x32xf32>, vector<32x128xf32>, vector<1x128xf32> -> vector<1x128xf32>
    %374 = arith.addf %370, %373 : vector<1x128xf32>
    %375 = arith.negf %374 : vector<1x128xf32>
    %376 = math.exp %375 : vector<1x128xf32>
    %cst_181 = arith.constant 1.000000e+00 : f32
    %377 = vector.broadcast %cst_181 : f32 to vector<1x128xf32>
    %378 = arith.addf %377, %376 : vector<1x128xf32>
    %379 = arith.divf %377, %378 : vector<1x128xf32>
    %380 = math.tanh %374 : vector<1x128xf32>
    %381 = vector.extract_strided_slice %379 {offsets = [0, 0], sizes = [1, 32], strides = [1, 1]} : vector<1x128xf32> to vector<1x32xf32>
    %382 = vector.extract_strided_slice %379 {offsets = [0, 32], sizes = [1, 32], strides = [1, 1]} : vector<1x128xf32> to vector<1x32xf32>
    %383 = vector.extract_strided_slice %380 {offsets = [0, 64], sizes = [1, 32], strides = [1, 1]} : vector<1x128xf32> to vector<1x32xf32>
    %384 = vector.extract_strided_slice %379 {offsets = [0, 96], sizes = [1, 32], strides = [1, 1]} : vector<1x128xf32> to vector<1x32xf32>
    %385 = arith.mulf %382, %341 : vector<1x32xf32>
    %386 = arith.mulf %381, %383 : vector<1x32xf32>
    %387 = arith.addf %385, %386 : vector<1x32xf32>
    %388 = math.tanh %387 : vector<1x32xf32>
    %389 = arith.mulf %384, %388 : vector<1x32xf32>
    %c1_182 = arith.constant 1 : index
    %c0_183 = arith.constant 0 : index
    %c0_184 = arith.constant 0 : index
    %390 = vector.load %arg3[%c1_182, %c0_183, %c0_184] : memref<2x32x128xf32, #tpu.memory_space<vmem>>, vector<1x32x128xf32>
    %391 = vector.shape_cast %390 : vector<1x32x128xf32> to vector<32x128xf32>
    %cst_185 = arith.constant dense<0.000000e+00> : vector<1x128xf32>
    %392 = tpu.matmul %389, %391, %cst_185 {dimension_numbers = #tpu.dot_dimension_numbers<[1], [0], [0], [1], [0, 0, 1, 1], [], []>} : vector<1x32xf32>, vector<32x128xf32>, vector<1x128xf32> -> vector<1x128xf32>
    %c1_186 = arith.constant 1 : index
    %c0_187 = arith.constant 0 : index
    %c0_188 = arith.constant 0 : index
    %393 = vector.load %arg4[%c1_186, %c0_187, %c0_188] : memref<2x32x128xf32, #tpu.memory_space<vmem>>, vector<1x32x128xf32>
    %394 = vector.shape_cast %393 : vector<1x32x128xf32> to vector<32x128xf32>
    %cst_189 = arith.constant dense<0.000000e+00> : vector<1x128xf32>
    %395 = tpu.matmul %368, %394, %cst_189 {dimension_numbers = #tpu.dot_dimension_numbers<[1], [0], [0], [1], [0, 0, 1, 1], [], []>} : vector<1x32xf32>, vector<32x128xf32>, vector<1x128xf32> -> vector<1x128xf32>
    %396 = arith.addf %392, %395 : vector<1x128xf32>
    %c1_190 = arith.constant 1 : index
    %c0_191 = arith.constant 0 : index
    %c0_192 = arith.constant 0 : index
    %397 = vector.load %arg5[%c1_190, %c0_191, %c0_192] : memref<2x1x128xf32, #tpu.memory_space<vmem>>, vector<1x1x128xf32>
    %398 = vector.shape_cast %397 : vector<1x1x128xf32> to vector<1x128xf32>
    %399 = arith.addf %396, %398 : vector<1x128xf32>
    %400 = arith.negf %399 : vector<1x128xf32>
    %401 = math.exp %400 : vector<1x128xf32>
    %cst_193 = arith.constant 1.000000e+00 : f32
    %402 = vector.broadcast %cst_193 : f32 to vector<1x128xf32>
    %403 = arith.addf %402, %401 : vector<1x128xf32>
    %404 = arith.divf %402, %403 : vector<1x128xf32>
    %405 = math.tanh %399 : vector<1x128xf32>
    %406 = vector.extract_strided_slice %404 {offsets = [0, 0], sizes = [1, 32], strides = [1, 1]} : vector<1x128xf32> to vector<1x32xf32>
    %407 = vector.extract_strided_slice %404 {offsets = [0, 32], sizes = [1, 32], strides = [1, 1]} : vector<1x128xf32> to vector<1x32xf32>
    %408 = vector.extract_strided_slice %405 {offsets = [0, 64], sizes = [1, 32], strides = [1, 1]} : vector<1x128xf32> to vector<1x32xf32>
    %409 = vector.extract_strided_slice %404 {offsets = [0, 96], sizes = [1, 32], strides = [1, 1]} : vector<1x128xf32> to vector<1x32xf32>
    %410 = arith.mulf %407, %366 : vector<1x32xf32>
    %411 = arith.mulf %406, %408 : vector<1x32xf32>
    %412 = arith.addf %410, %411 : vector<1x32xf32>
    %413 = math.tanh %412 : vector<1x32xf32>
    %414 = arith.mulf %409, %413 : vector<1x32xf32>
    %c7_194 = arith.constant 7 : index
    %c0_195 = arith.constant 0 : index
    %415 = vector.load %arg14[%c7_194, %c0_195] : memref<8x32xf32, #tpu.memory_space<vmem>>, vector<1x32xf32>
    tpu.vector_store %arg14[%c7_194, %c0_195], %414 {strides = array<i32>} : memref<8x32xf32, #tpu.memory_space<vmem>>, vector<1x32xf32>,
    %c0_196 = arith.constant 0 : index
    %c0_197 = arith.constant 0 : index
    %416 = vector.load %arg14[%c0_196, %c0_197] : memref<8x32xf32, #tpu.memory_space<vmem>>, vector<8x32xf32>
    %c0_198 = arith.constant 0 : index
    %c0_199 = arith.constant 0 : index
    %417 = vector.load %arg8[%c0_198, %c0_199] : memref<32x32xf32, #tpu.memory_space<vmem>>, vector<32x32xf32>
    %cst_200 = arith.constant dense<0.000000e+00> : vector<8x32xf32>
    %418 = tpu.matmul %416, %417, %cst_200 {dimension_numbers = #tpu.dot_dimension_numbers<[1], [0], [0], [1], [0, 0, 1, 1], [], []>} : vector<8x32xf32>, vector<32x32xf32>, vector<8x32xf32> -> vector<8x32xf32>
    %c0_201 = arith.constant 0 : index
    %c0_202 = arith.constant 0 : index
    %419 = vector.load %arg9[%c0_201, %c0_202] : memref<1x32xf32, #tpu.memory_space<vmem>>, vector<1x32xf32>
    %420 = vector.broadcast %419 : vector<1x32xf32> to vector<8x32xf32>
    %421 = arith.addf %418, %420 : vector<8x32xf32>
    %c0_203 = arith.constant 0 : index
    %c0_204 = arith.constant 0 : index
    %422 = vector.load %arg10[%c0_203, %c0_204] : memref<8x32xf32, #tpu.memory_space<vmem>>, vector<8x32xf32>
    tpu.vector_store %arg10[%c0_203, %c0_204], %421 {strides = array<i32>} : memref<8x32xf32, #tpu.memory_space<vmem>>, vector<8x32xf32>,
    %c0_205 = arith.constant 0 : index
    %c0_206 = arith.constant 0 : index
    %c0_207 = arith.constant 0 : index
    %423 = vector.load %arg11[%c0_205, %c0_206, %c0_207] : memref<2x1x32xf32, #tpu.memory_space<vmem>>, vector<1x1x32xf32>
    %424 = vector.shape_cast %423 : vector<1x1x32xf32> to vector<1x32xf32>
    %425 = vector.shape_cast %389 : vector<1x32xf32> to vector<1x1x32xf32>
    tpu.vector_store %arg11[%c0_205, %c0_206, %c0_207], %425 {strides = array<i32>} : memref<2x1x32xf32, #tpu.memory_space<vmem>>, vector<1x1x32xf32>,
    %c0_208 = arith.constant 0 : index
    %c0_209 = arith.constant 0 : index
    %c0_210 = arith.constant 0 : index
    %426 = vector.load %arg12[%c0_208, %c0_209, %c0_210] : memref<2x1x32xf32, #tpu.memory_space<vmem>>, vector<1x1x32xf32>
    %427 = vector.shape_cast %426 : vector<1x1x32xf32> to vector<1x32xf32>
    %428 = vector.shape_cast %387 : vector<1x32xf32> to vector<1x1x32xf32>
    tpu.vector_store %arg12[%c0_208, %c0_209, %c0_210], %428 {strides = array<i32>} : memref<2x1x32xf32, #tpu.memory_space<vmem>>, vector<1x1x32xf32>,
    %c1_211 = arith.constant 1 : index
    %c0_212 = arith.constant 0 : index
    %c0_213 = arith.constant 0 : index
    %429 = vector.load %arg11[%c1_211, %c0_212, %c0_213] : memref<2x1x32xf32, #tpu.memory_space<vmem>>, vector<1x1x32xf32>
    %430 = vector.shape_cast %429 : vector<1x1x32xf32> to vector<1x32xf32>
    %431 = vector.shape_cast %414 : vector<1x32xf32> to vector<1x1x32xf32>
    tpu.vector_store %arg11[%c1_211, %c0_212, %c0_213], %431 {strides = array<i32>} : memref<2x1x32xf32, #tpu.memory_space<vmem>>, vector<1x1x32xf32>,
    %c1_214 = arith.constant 1 : index
    %c0_215 = arith.constant 0 : index
    %c0_216 = arith.constant 0 : index
    %432 = vector.load %arg12[%c1_214, %c0_215, %c0_216] : memref<2x1x32xf32, #tpu.memory_space<vmem>>, vector<1x1x32xf32>
    %433 = vector.shape_cast %432 : vector<1x1x32xf32> to vector<1x32xf32>
    %434 = vector.shape_cast %412 : vector<1x32xf32> to vector<1x1x32xf32>
    tpu.vector_store %arg12[%c1_214, %c0_215, %c0_216], %434 {strides = array<i32>} : memref<2x1x32xf32, #tpu.memory_space<vmem>>, vector<1x1x32xf32>,
    return
  }
  func.func @transform_0(%arg0: i32, %arg1: memref<8xi32, #tpu.memory_space<smem>>) -> (i32, i32) {
    %c0_i32 = arith.constant 0 : i32
    %c0_i32_0 = arith.constant 0 : i32
    %c0_i32_1 = arith.constant 0 : i32
    return %c0_i32, %c0_i32_0 : i32, i32
  }
  func.func @transform_1(%arg0: i32, %arg1: memref<8xi32, #tpu.memory_space<smem>>) -> (i32, i32, i32) {
    %c0_i32 = arith.constant 0 : i32
    %c0_i32_0 = arith.constant 0 : i32
    %c0_i32_1 = arith.constant 0 : i32
    %c0_i32_2 = arith.constant 0 : i32
    return %c0_i32, %c0_i32_0, %c0_i32_1 : i32, i32, i32
  }
  func.func @transform_2(%arg0: i32, %arg1: memref<8xi32, #tpu.memory_space<smem>>) -> (i32, i32, i32) {
    %c0_i32 = arith.constant 0 : i32
    %c0_i32_0 = arith.constant 0 : i32
    %c0_i32_1 = arith.constant 0 : i32
    %c0_i32_2 = arith.constant 0 : i32
    return %c0_i32, %c0_i32_0, %c0_i32_1 : i32, i32, i32
  }
  func.func @transform_3(%arg0: i32, %arg1: memref<8xi32, #tpu.memory_space<smem>>) -> (i32, i32, i32) {
    %c0_i32 = arith.constant 0 : i32
    %c0_i32_0 = arith.constant 0 : i32
    %c0_i32_1 = arith.constant 0 : i32
    %c0_i32_2 = arith.constant 0 : i32
    return %c0_i32, %c0_i32_0, %c0_i32_1 : i32, i32, i32
  }
  func.func @transform_4(%arg0: i32, %arg1: memref<8xi32, #tpu.memory_space<smem>>) -> (i32, i32, i32) {
    %c0_i32 = arith.constant 0 : i32
    %c0_i32_0 = arith.constant 0 : i32
    %c0_i32_1 = arith.constant 0 : i32
    %c0_i32_2 = arith.constant 0 : i32
    return %c0_i32, %c0_i32_0, %c0_i32_1 : i32, i32, i32
  }
  func.func @transform_5(%arg0: i32, %arg1: memref<8xi32, #tpu.memory_space<smem>>) -> (i32, i32, i32) {
    %c0_i32 = arith.constant 0 : i32
    %c0_i32_0 = arith.constant 0 : i32
    %c0_i32_1 = arith.constant 0 : i32
    %c0_i32_2 = arith.constant 0 : i32
    return %c0_i32, %c0_i32_0, %c0_i32_1 : i32, i32, i32
  }
  func.func @transform_6(%arg0: i32, %arg1: memref<8xi32, #tpu.memory_space<smem>>) -> (i32, i32) {
    %c0_i32 = arith.constant 0 : i32
    %c0_i32_0 = arith.constant 0 : i32
    %c0_i32_1 = arith.constant 0 : i32
    return %c0_i32, %c0_i32_0 : i32, i32
  }
  func.func @transform_7(%arg0: i32, %arg1: memref<8xi32, #tpu.memory_space<smem>>) -> (i32, i32) {
    %c0_i32 = arith.constant 0 : i32
    %c0_i32_0 = arith.constant 0 : i32
    %c0_i32_1 = arith.constant 0 : i32
    return %c0_i32, %c0_i32_0 : i32, i32
  }
  func.func @transform_8(%arg0: i32, %arg1: memref<8xi32, #tpu.memory_space<smem>>) -> (i32, i32) {
    %c0_i32 = arith.constant 0 : i32
    %c0_i32_0 = arith.constant 0 : i32
    %c0_i32_1 = arith.constant 0 : i32
    return %c0_i32, %c0_i32_0 : i32, i32
  }
  func.func @transform_9(%arg0: i32, %arg1: memref<8xi32, #tpu.memory_space<smem>>) -> (i32, i32, i32) {
    %c0_i32 = arith.constant 0 : i32
    %c0_i32_0 = arith.constant 0 : i32
    %c0_i32_1 = arith.constant 0 : i32
    %c0_i32_2 = arith.constant 0 : i32
    return %c0_i32, %c0_i32_0, %c0_i32_1 : i32, i32, i32
  }
  func.func @transform_10(%arg0: i32, %arg1: memref<8xi32, #tpu.memory_space<smem>>) -> (i32, i32, i32) {
    %c0_i32 = arith.constant 0 : i32
    %c0_i32_0 = arith.constant 0 : i32
    %c0_i32_1 = arith.constant 0 : i32
    %c0_i32_2 = arith.constant 0 : i32
    return %c0_i32, %c0_i32_0, %c0_i32_1 : i32, i32, i32
  }
}

</mosaic_0001>

<bundles_post_ra>
// kernel: tpu_custom_call.1
= control target key start
LH: loop header
LB: loop body
LE: loop exit
PB: predicated region body
PF: predicated region fallthrough
CT: control target
= control target key end

     0   :  { %s2082_s20 = smov [#allocation5]   ;;  %s2522_s0 = inlined_call_operand.hbm [shape: s32[8], index: 0, kind: input, shape index: {}]   ;;  %s2523_s1 = inlined_call_operand.hbm [shape: f32[32,32], index: 1, kind: input, shape index: {}]   ;;  %s2524_s2 = inlined_call_operand.hbm [shape: f32[2,32,128], index: 2, kind: input, shape index: {}]   ;;  %s2525_s3 = inlined_call_operand.hbm [shape: f32[2,32,128], index: 3, kind: input, shape index: {}]   ;;  %s2526_s4 = inlined_call_operand.vmem [shape: f32[2,1,128], index: 4, kind: input, shape index: {}]   ;;  %s2527_s5 = inlined_call_operand.vmem [shape: f32[2,1,32], index: 5, kind: input, shape index: {}]   ;;  %s2528_s6 = inlined_call_operand.hbm [shape: f32[2,1,32], index: 6, kind: input, shape index: {}]   ;;  %s2529_s7 = inlined_call_operand.hbm [shape: f32[32,32], index: 7, kind: input, shape index: {}]   ;;  %s2530_s8 = inlined_call_operand.vmem [shape: f32[1,32], index: 8, kind: input, shape index: {}]   ;;  %s2531_s9 = inlined_call_operand.hbm [shape: f32[8,32], index: 9, kind: output, shape index: {0}]   ;;  %s2532_s10 = inlined_call_operand.hbm [shape: f32[2,1,32], index: 10, kind: output, shape index: {1}]   ;;  %s2533_s11 = inlined_call_operand.hbm [shape: f32[2,1,32], index: 11, kind: output, shape index: {2}]  }
   0x1   :  { %s18_s19 = sshll.u32 %s2522_s0, 4  ;;  %s19_s19 = int_to_ptr.hbm [resolvable:$true] %s18_s19 }
   0x2   :  { %21 = dma.hbm_to_smem %s19_s19, 16, %s2082_s20, [#allocation4] }
   0x3   :  { %2070 = dma.done.wait [#allocation4], 16 }
   0x4   :  { %2071 = vsyncadd [#allocation4], 4294967280 }
   0x5   :  { %24 = sfence }
   0x6   :  { %25 = vsyncpa [#allocation7], 0 }
   0x7   :  { %26 = vsyncpa [#allocation10], 0 }
   0x8   :  { %27 = vsyncpa [#allocation13], 0 }
   0x9   :  { %28 = vsyncpa [#allocation8], 0 }
   0xa   :  { %29 = vsyncpa [#allocation17], 0  ;;  %s47_s23 = sshll.u32 %s2524_s2, 4  ;;  %s2083_s24 = smov [#allocation9]   ;;  %s48_s23 = int_to_ptr.hbm [resolvable:$true] %s47_s23 }
   0xb   :  { %s49_s25 = sshll.u32 %s2083_s24, 4  ;;  %s77_s27 = sshll.u32 %s2528_s6, 4  ;;  %s50_s25 = int_to_ptr.vmem [resolvable:$true] %s49_s25  ;;  %s78_s27 = int_to_ptr.hbm [resolvable:$true] %s77_s27 }
   0xc   :  { %s2084_s28 = smov 128   ;;  %s2085_s29 = smov 8  }
   0xd   :  { %55 = dma.hbm_to_vmem [thread:$0]  %s48_s23, 1024, %s50_s25, [#allocation10], %s2084_s28, %s2084_s28, %s2085_s29  }
   0xe   :  { %s2086_s30 = smov [#allocation12]   ;;  %s2087_s13 = smov 16  }
   0xf   :  { %s79_s12 = sshll.u32 %s2086_s30, 4  ;;  %s2088_s2 = smov 1   ;;  %s80_s12 = int_to_ptr.vmem [resolvable:$true] %s79_s12 }
  0x10   :  { %85 = dma.hbm_to_vmem [thread:$0]  %s78_s27, 32, %s80_s12, [#allocation13], %s2087_s13, %s2087_s13, %s2088_s2  }
  0x11   :  { %s34_s6 = sshll.u32 %s2523_s1, 4  ;;  %s2089_s16 = smov [#allocation6]   ;;  %s35_s6 = int_to_ptr.hbm [resolvable:$true] %s34_s6 }
  0x12   :  { %s36_s17 = sshll.u32 %s2089_s16, 4  ;;  %s60_s20 = sshll.u32 %s2525_s3, 4  ;;  %s37_s17 = int_to_ptr.vmem [resolvable:$true] %s36_s17  ;;  %s61_s20 = int_to_ptr.hbm [resolvable:$true] %s60_s20 }
  0x13   :  { %42 = dma.hbm_to_vmem [thread:$0]  %s35_s6, 512, %s37_s17, [#allocation7], %s2084_s28, %s2084_s28, %s2085_s29  }
  0x14   :  { %s2090_s21 = smov [#allocation11]   ;;  %s90_s25 = sshll.u32 %s2529_s7, 4  ;;  %s91_s25 = int_to_ptr.hbm [resolvable:$true] %s90_s25 }
  0x15   :  { %s62_s22 = sshll.u32 %s2090_s21, 4  ;;  %s2091_s1 = smov [#allocation14]   ;;  %s63_s22 = int_to_ptr.vmem [resolvable:$true] %s62_s22 }
  0x16   :  { %68 = dma.hbm_to_vmem [thread:$0]  %s61_s20, 1024, %s63_s22, [#allocation10], %s2084_s28, %s2084_s28, %s2085_s29  }
  0x17   :  { %s92_s0 = sshll.u32 %s2091_s1, 4  ;;  %s93_s0 = int_to_ptr.vmem [resolvable:$true] %s92_s0 }
  0x18   :  { %98 = dma.hbm_to_vmem [thread:$0]  %s91_s25, 512, %s93_s0, [#allocation13], %s2084_s28, %s2084_s28, %s2085_s29  }
  0x19   :  { %2072 = dma.done.wait [#allocation7], 512  }
  0x1a   :  { %2073 = vsyncadd [#allocation7], 4294966784 }
  0x1b   :  { %2074 = dma.done.wait [#allocation10], 2048  }
  0x1c   :  { %2075 = vsyncadd [#allocation10], 4294965248 }
  0x1d   :  { %2076 = dma.done.wait [#allocation13], 544  }
  0x1e   :  { %2077 = vsyncadd [#allocation13], 4294966752  ;;  %s121_s3 = sld [smem:[#allocation5]]  ;;  %vm124_vm0 = vcmask 253952   ;;  %v158_v0 = vld [vmem:[#allocation9 + $0x18] sm:$0xff]  ;;  %v157_v1 = vld [vmem:[#allocation9 + $0x10] sm:$0xff] }
  0x1f   :  { %s1660_s7 = sld [smem:[#allocation5 + $0x1]]  ;;  %v2195_v2 = vld [vmem:[#allocation11 + $0x18] sm:$0xff]  ;;  %179 = vmatpush.msra.mxu0 %v158_v0  ;;  %v156_v3 = vld [vmem:[#allocation9 + $0x8] sm:$0xff]  ;;  %v2200_v4 = vld [vmem:[#allocation11 + $0x10] sm:$0xff]  ;;  %vm163_vm1 = vcmask 261120   ;;  %s2092_s25 = smov 64  }
  0x20   :  { %s1661_s26 = sld [smem:[#allocation5 + $0x2]]  ;;  %212 = vmatpush.msra.mxu1 %v2195_v2  ;;  %v2204_v5 = vld [vmem:[#allocation11 + $0x8] sm:$0xff]  ;;  %v155_v8 = vld [vmem:[#allocation9] sm:$0xff]  ;;  %v187_v16 = vld [vmem:[%s2527_s5] sm:$0x1]  ;;  %s2093_s1 = smov 32  }
  0x21   :  { %s1662_s27 = sld [smem:[#allocation5 + $0x3]]  ;;  %180 = vmatpush.msra.mxu0 %v157_v1  ;;  %v2209_v11 = vld [vmem:[#allocation11] sm:$0xff]  ;;  %v1734_v18 = vld [vmem:[%s2526_s4] ss:$0 sm:$0xff]  ;;  %v2245_v45 = vld [vmem:[#allocation11 + $0x38] sm:$0xff]  ;;  %s2095_s21 = smov [#allocation16]  }
  0x22   :  { %s2191_s30 = sld [smem:[#allocation5 + $0x4]]  ;;  %213 = vmatpush.msra.mxu1 %v2200_v4  ;;  %v1735_v24 = vld [vmem:[#allocation12] ss:$0 sm:$0xff]  ;;  %v2247_v46 = vld [vmem:[#allocation9 + $0x38] sm:$0xff]  ;;  %v2249_v47 = vld [vmem:[#allocation11 + $0x30] sm:$0xff]  ;;  %288 = vmatpush.msra.mxu2 %v2245_v45  ;;  %s1613_s22 = sshll.u32 %s2095_s21, 4  ;;  %s1614_s22 = int_to_ptr.vmem [resolvable:$true] %s1613_s22 }
  0x23   :  { %s2193_s12 = sld [smem:[#allocation5 + $0x5]]  ;;  %181 = vmatpush.msra.mxu0 %v156_v3  ;;  %313 = vmatpush.msra.mxu3 %v2247_v46  ;;  %v2253_v48 = vld [vmem:[#allocation9 + $0x30] sm:$0xff]  ;;  %v2255_v49 = vld [vmem:[#allocation11 + $0x28] sm:$0xff]  ;;  %v2263_v51 = vld [vmem:[#allocation11 + $0x20] sm:$0xff] }
  0x24   :  { %s2197_s28 = sld [smem:[#allocation5 + $0x6]]  ;;  %s122_s14 = scalar_lea.vmem [#allocation6], %s121_s3  ;;  %214 = vmatpush.msra.mxu1 %v2204_v5  ;;  %v2257_v50 = vld [vmem:[#allocation9 + $0x28] sm:$0xff]  ;;  %289 = vmatpush.msra.mxu2 %v2249_v47  ;;  %v2265_v52 = vld [vmem:[#allocation9 + $0x20] sm:$0xff]  ;;  %v1668_v55 = vld [vmem:[%s2527_s5 + $0x1] sm:$0x1] }
  0x25   :  { %s2202_s29 = sld [smem:[#allocation5 + $0x7]]  ;;  %v123_v6 = vld [vmem:[%s122_s14] sm:$0x1]  ;;  %s127_s15 = scalar_lea.vmem [#allocation6], %s1660_s7  ;;  %182 = vmatpush.msra.mxu0 %v155_v8  ;;  %314 = vmatpush.msra.mxu3 %v2253_v48  ;;  %v1673_v62 = vld [vmem:[%s2526_s4 + $0x1] sm:$0x1] }
  0x26   :  { %v128_v7 = vld [vmem:[%s127_s15] sm:$0x1]  ;;  %125 = vst.msk [vmem:[#allocation2] sm:$0x1] %vm124_vm0, %v123_v6  ;;  %s131_s6 = scalar_lea.vmem [#allocation6], %s1661_s26  ;;  %215 = vmatpush.msra.mxu1 %v2209_v11  ;;  %290 = vmatpush.msra.mxu2 %v2255_v49  ;;  %s1628_s7 = sshll.u32 %s2533_s11, 4  ;;  %s1629_s7 = int_to_ptr.hbm [resolvable:$true] %s1628_s7 }
  0x27   :  { %v132_v9 = vld [vmem:[%s131_s6] sm:$0x1]  ;;  %129 = vst.msk [vmem:[#allocation2 + $0x1] sm:$0x1] %vm124_vm0, %v128_v7  ;;  %s135_s16 = scalar_lea.vmem [#allocation6], %s1662_s27  ;;  %387 = vmatpush.msrb.mxu0 %v2195_v2  ;;  %1669 = vmatmul.msk.f32.vlgmr.msra.gmra.mxu1 %vm163_vm1, %v187_v16  ;;  %s2097_s27 = smov [#allocation15]  }
  0x28   :  { %v136_v10 = vld [vmem:[%s135_s16] sm:$0x1]  ;;  %133 = vst.msk [vmem:[#allocation2 + $0x2] sm:$0x1] %vm124_vm0, %v132_v9  ;;  %s139_s17 = scalar_lea.vmem [#allocation6], %s2191_s30  ;;  %461 = vmatpush.msrb.mxu1 %v2245_v45  ;;  %315 = vmatpush.msra.mxu3 %v2257_v50  ;;  %s1603_s30 = sshll.u32 %s2097_s27, 4  ;;  %s1604_s30 = int_to_ptr.vmem [resolvable:$true] %s1603_s30 }
  0x29   :  { %v140_v12 = vld [vmem:[%s139_s17] sm:$0x1]  ;;  %137 = vst.msk [vmem:[#allocation2 + $0x3] sm:$0x1] %vm124_vm0, %v136_v10  ;;  %s143_s18 = scalar_lea.vmem [#allocation6], %s2193_s12  ;;  %388 = vmatpush.msrb.mxu0 %v2200_v4  ;;  %291 = vmatpush.msra.mxu2 %v2263_v51 }
  0x2a   :  { %v144_v13 = vld [vmem:[%s143_s18] sm:$0x1]  ;;  %141 = vst.msk [vmem:[#allocation2 + $0x4] sm:$0x1] %vm124_vm0, %v140_v12  ;;  %s147_s19 = scalar_lea.vmem [#allocation6], %s2197_s28  ;;  %462 = vmatpush.msrb.mxu1 %v2249_v47  ;;  %316 = vmatpush.msra.mxu3 %v2265_v52 }
  0x2b   :  { %v148_v14 = vld [vmem:[%s147_s19] sm:$0x1]  ;;  %145 = vst.msk [vmem:[#allocation2 + $0x5] sm:$0x1] %vm124_vm0, %v144_v13  ;;  %s151_s20 = scalar_lea.vmem [#allocation6], %s2202_s29  ;;  %389 = vmatpush.msrb.mxu0 %v2204_v5  ;;  %487 = vmatpush.msrb.mxu2 %v2247_v46  ;;  %s1605_s29 = sshll.u32 %s2531_s9, 4  ;;  %s1606_s29 = int_to_ptr.hbm [resolvable:$true] %s1605_s29 }
  0x2c   :  { %v152_v15 = vld [vmem:[%s151_s20] sm:$0x1]  ;;  %149 = vst.msk [vmem:[#allocation2 + $0x6] sm:$0x1] %vm124_vm0, %v148_v14  ;;  %463 = vmatpush.msrb.mxu1 %v2255_v49  ;;  %555 = vmatpush.msrb.mxu3 %v2195_v2  ;;  %v1736_v3 = vld [vmem:[#allocation12 + $0x1] ss:$0 sm:$0xff] }
  0x2d   :  { %153 = vst.msk [vmem:[#allocation2 + $0x7] sm:$0x1] %vm124_vm0, %v152_v15  ;;  %390 = vmatpush.msrb.mxu0 %v2209_v11  ;;  %488 = vmatpush.msrb.mxu2 %v2253_v48 }
  0x2e   :  { %464 = vmatpush.msrb.mxu1 %v2263_v51  ;;  %556 = vmatpush.msrb.mxu3 %v2200_v4 }
  0x2f   :  { %489 = vmatpush.msrb.mxu2 %v2257_v50 }
  0x30   :  { %655 = vmatpush.msra.mxu1 %v2247_v46  ;;  %557 = vmatpush.msrb.mxu3 %v2204_v5 }
  0x31   :  { %490 = vmatpush.msrb.mxu2 %v2265_v52 }
  0x32   :  { %656 = vmatpush.msra.mxu1 %v2253_v48  ;;  %558 = vmatpush.msrb.mxu3 %v2209_v11 }
  0x33   :  { %1671 = vmatmul.msk.f32.vlgmr.msra.gmra.mxu2 %vm163_vm1, %v1668_v55 }
  0x34   :  { %v154_v17 = vld [vmem:[#allocation2] sm:$0xff]  ;;  %657 = vmatpush.msra.mxu1 %v2257_v50  ;;  %723 = vmatpush.msra.mxu2 %v2195_v2 }
  0x35   :  { %1667 = vmatmul.msk.f32.vlgmr.msra.gmra.mxu0 %vm163_vm1, %v154_v17 }
  0x36   :  { %629 = vmatpush.msra.mxu0 %v2245_v45  ;;  %658 = vmatpush.msra.mxu1 %v2265_v52 }
  0x37   :  { %724 = vmatpush.msra.mxu2 %v2200_v4 }
  0x38   :  { %630 = vmatpush.msra.mxu0 %v2249_v47 }
  0x39   :  { %725 = vmatpush.msra.mxu2 %v2204_v5 }
  0x3a   :  { %631 = vmatpush.msra.mxu0 %v2255_v49 }
  0x3b   :  { %726 = vmatpush.msra.mxu2 %v2209_v11 }
  0x3c   :  { %632 = vmatpush.msra.mxu0 %v2263_v51 }
  0xa4   :  { %v217_v20 = vpop.f32.mrf.mxu1 }
  0xb2   :  { %v184_v19 = vpop.f32.mrf.mxu0 }
  0xb3   :  { %v2235_v21 = vadd.f32 %v1734_v18, %v184_v19 }
  0xb5   :  { %v220_v22 = vadd.f32 %v217_v20, %v2235_v21 }
  0xb6   :  { %v293_v60 = vpop.f32.mrf.mxu2 }
  0xb7   :  { %1738 = vtanh.f32 %v220_v22  ;;  %v1670_v25 = vmul.f32 -1.442695, %v220_v22 }
  0xb9   :  { %1740 = vpow2.f32 %v1670_v25 }
  0xbd   :  { %v1739_v23 = vpop.eup %1738 }
  0xbe   :  { %248 = vrot.lane.b32.xlu0 %v1739_v23, %s2092_s25 }
  0xbf   :  { %v1741_v26 = vpop.eup %1740 }
  0xc0   :  { %v224_v27 = vadd.f32 1.0, %v1741_v26 }
  0xc2   :  { %1742 = vrcp.f32 %v224_v27  ;;  %v236_v33 = vand.u32 2147483648, %v224_v27  ;;  %vm230_vm3 = vweird.f32 %v224_v27  ;;  %v234_v34 = vand.u32 2147483647, %v224_v27 }
  0xc4   :  { %v237_v36 = vor.u32 1.1754944e-38, %v236_v33  ;;  %vm235_vm5 = vcmp.eq.f32.partialorder %v234_v34, 8.507059e+37 }
  0xc6   :  { %243 = vrot.lane.b32.xlu0 %v1735_v24, %s2093_s1 }
  0xc8   :  { %v1743_v28 = vpop.eup %1742 }
  0xc9   :  { %v226_v29 = vmul.f32 %v1743_v28, %v224_v27  ;;  %vm231_vm2 = vweird.f32 %v1743_v28 }
  0xca   :  { %vm232_vm4 = vmor %vm230_vm3, %vm231_vm2 }
  0xcb   :  { %v227_v30 = vsub.f32 1.0, %v226_v29 }
  0xcd   :  { %v228_v31 = vmul.f32 %v1743_v28, %v227_v30 }
  0xcf   :  { %v229_v32 = vadd.f32 %v1743_v28, %v228_v31 }
  0xd1   :  { %v233_v35 = vsel %vm232_vm4, %v1743_v28, %v229_v32 }
  0xd2   :  { %v238_v38 = vsel %vm235_vm5, %v237_v36, %v233_v35 }
 0x130   :  { %v249_v37 = vpop.permute.xlu0 %248 }
 0x131   :  { %v251_v39 = vmul.f32 %v249_v37, %v238_v38 }
 0x133   :  { %253 = vrot.lane.b32.xlu1 %v251_v39, %s2093_s1 }
 0x138   :  { %v244_v40 = vpop.permute.xlu0 %243 }
 0x139   :  { %v246_v41 = vmul.f32 %v244_v40, %v238_v38 }
 0x1a5   :  { %v254_v42 = vpop.permute.xlu1 %253 }
 0x1a6   :  { %v2241_v43 = vadd.f32 %v254_v42, %v246_v41 }
 0x1a8   :  { %1744 = vtanh.f32 %v2241_v43  ;;  %v420_v39 = vrot.slane %v2241_v43, 7 }
 0x1ae   :  { %v1745_v44 = vpop.eup %1744 }
 0x1af   :  { %259 = vrot.lane.b32.xlu1 %v1745_v44, %s2092_s25 }
 0x221   :  { %v260_v53 = vpop.permute.xlu1 %259 }
 0x222   :  { %v262_v54 = vmul.f32 %v260_v53, %v238_v38 }
 0x224   :  { %297 = vrot.lane.b32.xlu2 %v262_v54, %s2093_s1 }
 0x27e   :  { %v298_v56 = vpop.permute.xlu2 %297 }
 0x27f   :  { %1672 = vmatmul.msk.f32.vlgmr.msra.gmra.mxu3 %vm163_vm1, %v298_v56  ;;  %1675 = vmatmul.msk.f32.vlgmr.msrb.gmra.mxu0 %vm163_vm1, %v298_v56 }
 0x280   :  { %797 = vmatpush.msra.mxu3 %v2245_v45  ;;  %823 = vmatpush.msrb.mxu0 %v2247_v46 }
 0x282   :  { %798 = vmatpush.msra.mxu3 %v2249_v47  ;;  %824 = vmatpush.msrb.mxu0 %v2253_v48 }
 0x284   :  { %799 = vmatpush.msra.mxu3 %v2255_v49  ;;  %825 = vmatpush.msrb.mxu0 %v2257_v50 }
 0x286   :  { %800 = vmatpush.msra.mxu3 %v2263_v51  ;;  %826 = vmatpush.msrb.mxu0 %v2265_v52 }
 0x2fc   :  { %v392_v57 = vpop.f32.mrf.mxu0 }
 0x2fd   :  { %v396_v58 = vrot.slane %v392_v57, 7 }
 0x2ff   :  { %v398_v59 = vadd.f32 %v396_v58, %v2235_v21 }
 0x301   :  { %1746 = vtanh.f32 %v398_v59  ;;  %v1676_v7 = vmul.f32 -1.442695, %v398_v59 }
 0x302   :  { %v318_v61 = vpop.f32.mrf.mxu3 }
 0x303   :  { %v319_v63 = vadd.f32 %v318_v61, %v293_v60 }
 0x305   :  { %v323_v0 = vadd.f32 %v1673_v62, %v319_v63 }
 0x307   :  { %v1747_v1 = vpop.eup %1746  ;;  %1748 = vtanh.f32 %v323_v0  ;;  %v1674_v13 = vmul.f32 -1.442695, %v323_v0  ;;  %v1679_v0 = vld [vmem:[%s2526_s4 + $0x1] sm:$0x1] }
 0x308   :  { %424 = vrot.lane.b32.xlu2 %v1747_v1, %s2092_s25  ;;  %1750 = vpow2.f32 %v1676_v7 }
 0x30d   :  { %v1749_v6 = vpop.eup %1748 }
 0x30e   :  { %351 = vrot.lane.b32.xlu0 %v1749_v6, %s2092_s25  ;;  %v1751_v8 = vpop.eup %1750 }
 0x30f   :  { %v402_v9 = vadd.f32 1.0, %v1751_v8 }
 0x310   :  { %346 = vrot.lane.b32.xlu2 %v1736_v3, %s2093_s1 }
 0x311   :  { %1752 = vrcp.f32 %v402_v9  ;;  %v414_v17 = vand.u32 2147483648, %v402_v9  ;;  %vm408_vm7 = vweird.f32 %v402_v9  ;;  %v412_v19 = vand.u32 2147483647, %v402_v9 }
 0x312   :  { %1754 = vpow2.f32 %v1674_v13 }
 0x313   :  { %v415_v23 = vor.u32 1.1754944e-38, %v414_v17  ;;  %vm413_vm9 = vcmp.eq.f32.partialorder %v412_v19, 8.507059e+37 }
 0x317   :  { %v1753_v10 = vpop.eup %1752 }
 0x318   :  { %v404_v12 = vmul.f32 %v1753_v10, %v402_v9  ;;  %vm409_vm6 = vweird.f32 %v1753_v10  ;;  %v1755_v18 = vpop.eup %1754 }
 0x319   :  { %vm410_vm8 = vmor %vm408_vm7, %vm409_vm6  ;;  %v327_v22 = vadd.f32 1.0, %v1755_v18 }
 0x31a   :  { %v405_v14 = vsub.f32 1.0, %v404_v12 }
 0x31b   :  { %1756 = vrcp.f32 %v327_v22  ;;  %v339_v32 = vand.u32 2147483648, %v327_v22  ;;  %vm333_vm11 = vweird.f32 %v327_v22  ;;  %v337_v33 = vand.u32 2147483647, %v327_v22 }
 0x31c   :  { %v406_v15 = vmul.f32 %v1753_v10, %v405_v14 }
 0x31d   :  { %v340_v35 = vor.u32 1.1754944e-38, %v339_v32  ;;  %vm338_vm13 = vcmp.eq.f32.partialorder %v337_v33, 8.507059e+37 }
 0x31e   :  { %v407_v16 = vadd.f32 %v1753_v10, %v406_v15 }
 0x320   :  { %v411_v20 = vsel %vm410_vm8, %v1753_v10, %v407_v16 }
 0x321   :  { %v416_v25 = vsel %vm413_vm9, %v415_v23, %v411_v20  ;;  %v1757_v27 = vpop.eup %1756 }
 0x322   :  { %v329_v28 = vmul.f32 %v1757_v27, %v327_v22  ;;  %vm334_vm10 = vweird.f32 %v1757_v27  ;;  %v422_v40 = vmul.f32 %v420_v39, %v416_v25 }
 0x323   :  { %vm335_vm12 = vmor %vm333_vm11, %vm334_vm10 }
 0x324   :  { %v330_v29 = vsub.f32 1.0, %v329_v28 }
 0x326   :  { %v331_v30 = vmul.f32 %v1757_v27, %v330_v29 }
 0x328   :  { %v332_v31 = vadd.f32 %v1757_v27, %v331_v30 }
 0x32a   :  { %v336_v34 = vsel %vm335_vm12, %v1757_v27, %v332_v31 }
 0x32b   :  { %v341_v36 = vsel %vm338_vm13, %v340_v35, %v336_v34 }
 0x362   :  { %v425_v24 = vpop.permute.xlu2 %424 }
 0x363   :  { %v427_v26 = vmul.f32 %v425_v24, %v416_v25 }
 0x365   :  { %429 = vrot.lane.b32.xlu1 %v427_v26, %s2093_s1 }
 0x36a   :  { %v347_v53 = vpop.permute.xlu2 %346 }
 0x36b   :  { %v349_v54 = vmul.f32 %v347_v53, %v341_v36 }
 0x380   :  { %v352_v37 = vpop.permute.xlu0 %351 }
 0x381   :  { %v354_v38 = vmul.f32 %v352_v37, %v341_v36 }
 0x383   :  { %356 = vrot.lane.b32.xlu0 %v354_v38, %s2093_s1 }
 0x3d7   :  { %v430_v41 = vpop.permute.xlu1 %429 }
 0x3d8   :  { %v2318_v42 = vadd.f32 %v430_v41, %v422_v40 }
 0x3da   :  { %1758 = vtanh.f32 %v2318_v42  ;;  %v588_v53 = vrot.slane %v2318_v42, 7 }
 0x3e0   :  { %v1759_v44 = vpop.eup %1758 }
 0x3e1   :  { %435 = vrot.lane.b32.xlu1 %v1759_v44, %s2092_s25 }
 0x3f5   :  { %v357_v55 = vpop.permute.xlu0 %356 }
 0x3f6   :  { %v2322_v56 = vadd.f32 %v357_v55, %v349_v54 }
 0x3f8   :  { %1760 = vtanh.f32 %v2322_v56 }
 0x3fe   :  { %v1761_v57 = vpop.eup %1760 }
 0x3ff   :  { %362 = vrot.lane.b32.xlu2 %v1761_v57, %s2092_s25 }
 0x453   :  { %v436_v43 = vpop.permute.xlu1 %435 }
 0x454   :  { %v438_v58 = vmul.f32 %v436_v43, %v416_v25 }
 0x456   :  { %v470_v59 = vrot.slane %v438_v58, 1 }
 0x458   :  { %471 = vrot.lane.b32.xlu0 %v470_v59, %s2093_s1 }
 0x459   :  { %v363_v60 = vpop.permute.xlu2 %362 }
 0x45a   :  { %v365_v61 = vmul.f32 %v363_v60, %v341_v36 }
 0x45c   :  { %367 = vrot.lane.b32.xlu1 %v365_v61, %s2093_s1 }
 0x4ca   :  { %v472_v62 = vpop.permute.xlu0 %471 }
 0x4cb   :  { %1678 = vmatmul.msk.f32.vlgmr.msrb.gmra.mxu2 %vm163_vm1, %v472_v62  ;;  %1681 = vmatmul.msk.f32.vlgmr.msrb.gmra.mxu3 %vm163_vm1, %v472_v62 }
 0x4cc   :  { %965 = vmatpush.msrb.mxu2 %v2245_v45  ;;  %991 = vmatpush.msrb.mxu3 %v2247_v46 }
 0x4ce   :  { %v368_v63 = vpop.permute.xlu1 %367  ;;  %966 = vmatpush.msrb.mxu2 %v2249_v47  ;;  %992 = vmatpush.msrb.mxu3 %v2253_v48 }
 0x4cf   :  { %370 = vst.msk [vmem:[#allocation3] sm:$0x1] %vm124_vm0, %v368_v63  ;;  %1677 = vmatmul.msk.f32.vlgmr.msrb.gmra.mxu1 %vm163_vm1, %v368_v63 }
 0x4d0   :  { %891 = vmatpush.msrb.mxu1 %v2195_v2  ;;  %967 = vmatpush.msrb.mxu2 %v2255_v49 }
 0x4d1   :  { %993 = vmatpush.msrb.mxu3 %v2257_v50 }
 0x4d2   :  { %892 = vmatpush.msrb.mxu1 %v2200_v4  ;;  %968 = vmatpush.msrb.mxu2 %v2263_v51 }
 0x4d3   :  { %994 = vmatpush.msrb.mxu3 %v2265_v52 }
 0x4d4   :  { %893 = vmatpush.msrb.mxu1 %v2204_v5 }
 0x4d6   :  { %894 = vmatpush.msrb.mxu1 %v2209_v11 }
 0x54c   :  { %v466_v45 = vpop.f32.mrf.mxu1 }
 0x54e   :  { %v492_v47 = vpop.f32.mrf.mxu2  ;;  %v560_v1 = vpop.f32.mrf.mxu3 }
 0x54f   :  { %v493_v3 = vadd.f32 %v492_v47, %v466_v45  ;;  %v564_v6 = vrot.slane %v560_v1, 6 }
 0x551   :  { %v496_v7 = vadd.f32 %v1679_v0, %v493_v3  ;;  %v566_v8 = vadd.f32 %v564_v6, %v2235_v21 }
 0x553   :  { %1762 = vtanh.f32 %v496_v7  ;;  %v1682_v12 = vmul.f32 -1.442695, %v566_v8  ;;  %v1680_v16 = vmul.f32 -1.442695, %v496_v7 }
 0x554   :  { %1764 = vtanh.f32 %v566_v8 }
 0x555   :  { %1766 = vpow2.f32 %v1682_v12 }
 0x559   :  { %v1763_v9 = vpop.eup %1762 }
 0x55a   :  { %v1765_v10 = vpop.eup %1764  ;;  %519 = vrot.lane.b32.xlu0 %v1763_v9, %s2092_s25 }
 0x55b   :  { %592 = vrot.lane.b32.xlu2 %v1765_v10, %s2092_s25  ;;  %v1767_v13 = vpop.eup %1766 }
 0x55c   :  { %v570_v14 = vadd.f32 1.0, %v1767_v13 }
 0x55e   :  { %1768 = vrcp.f32 %v570_v14  ;;  %v582_v24 = vand.u32 2147483648, %v570_v14  ;;  %vm576_vm15 = vweird.f32 %v570_v14  ;;  %v580_v25 = vand.u32 2147483647, %v570_v14 }
 0x55f   :  { %1770 = vpow2.f32 %v1680_v16 }
 0x560   :  { %v583_v27 = vor.u32 1.1754944e-38, %v582_v24  ;;  %vm581_vm3 = vcmp.eq.f32.partialorder %v580_v25, 8.507059e+37 }
 0x564   :  { %v1769_v15 = vpop.eup %1768 }
 0x565   :  { %v572_v17 = vmul.f32 %v1769_v15, %v570_v14  ;;  %v1771_v19 = vpop.eup %1770  ;;  %vm577_vm14 = vweird.f32 %v1769_v15 }
 0x566   :  { %v500_v22 = vadd.f32 1.0, %v1771_v19  ;;  %vm578_vm2 = vmor %vm576_vm15, %vm577_vm14 }
 0x567   :  { %v573_v18 = vsub.f32 1.0, %v572_v17 }
 0x568   :  { %1772 = vrcp.f32 %v500_v22  ;;  %v512_v36 = vand.u32 2147483648, %v500_v22  ;;  %vm506_vm5 = vweird.f32 %v500_v22  ;;  %v510_v37 = vand.u32 2147483647, %v500_v22 }
 0x569   :  { %v574_v20 = vmul.f32 %v1769_v15, %v573_v18 }
 0x56a   :  { %v513_v39 = vor.u32 1.1754944e-38, %v512_v36  ;;  %vm511_vm7 = vcmp.eq.f32.partialorder %v510_v37, 8.507059e+37 }
 0x56b   :  { %v575_v23 = vadd.f32 %v1769_v15, %v574_v20 }
 0x56d   :  { %v579_v26 = vsel %vm578_vm2, %v1769_v15, %v575_v23 }
 0x56e   :  { %v584_v28 = vsel %vm581_vm3, %v583_v27, %v579_v26  ;;  %v1773_v30 = vpop.eup %1772 }
 0x56f   :  { %v502_v32 = vmul.f32 %v1773_v30, %v500_v22  ;;  %vm507_vm4 = vweird.f32 %v1773_v30  ;;  %v590_v55 = vmul.f32 %v588_v53, %v584_v28 }
 0x570   :  { %vm508_vm6 = vmor %vm506_vm5, %vm507_vm4 }
 0x571   :  { %v503_v33 = vsub.f32 1.0, %v502_v32 }
 0x573   :  { %v504_v34 = vmul.f32 %v1773_v30, %v503_v33 }
 0x575   :  { %v505_v35 = vadd.f32 %v1773_v30, %v504_v34 }
 0x577   :  { %v509_v38 = vsel %vm508_vm6, %v1773_v30, %v505_v35 }
 0x578   :  { %v514_v41 = vsel %vm511_vm7, %v513_v39, %v509_v38 }
 0x579   :  { %v517_v54 = vmul.f32 %v514_v41, %v2322_v56 }
 0x5b5   :  { %v593_v29 = vpop.permute.xlu2 %592 }
 0x5b6   :  { %v595_v31 = vmul.f32 %v593_v29, %v584_v28 }
 0x5b8   :  { %597 = vrot.lane.b32.xlu1 %v595_v31, %s2093_s1 }
 0x5cc   :  { %v520_v40 = vpop.permute.xlu0 %519 }
 0x5cd   :  { %v522_v44 = vmul.f32 %v520_v40, %v514_v41 }
 0x5cf   :  { %524 = vrot.lane.b32.xlu2 %v522_v44, %s2093_s1 }
 0x629   :  { %v525_v57 = vpop.permute.xlu2 %524 }
 0x62a   :  { %v598_v43 = vpop.permute.xlu1 %597  ;;  %v2354_v58 = vadd.f32 %v525_v57, %v517_v54 }
 0x62b   :  { %v2356_v59 = vadd.f32 %v598_v43, %v590_v55 }
 0x62c   :  { %1774 = vtanh.f32 %v2354_v58 }
 0x62d   :  { %1776 = vtanh.f32 %v2356_v59 }
 0x632   :  { %v1775_v60 = vpop.eup %1774 }
 0x633   :  { %v1777_v61 = vpop.eup %1776  ;;  %530 = vrot.lane.b32.xlu1 %v1775_v60, %s2092_s25 }
 0x634   :  { %603 = vrot.lane.b32.xlu0 %v1777_v61, %s2092_s25 }
 0x6a5   :  { %v531_v42 = vpop.permute.xlu1 %530 }
 0x6a6   :  { %v604_v62 = vpop.permute.xlu0 %603  ;;  %v533_v56 = vmul.f32 %v531_v42, %v514_v41  ;;  %v756_v41 = vrot.slane %v2356_v59, 7 }
 0x6a7   :  { %v606_v63 = vmul.f32 %v604_v62, %v584_v28 }
 0x6a8   :  { %535 = vrot.lane.b32.xlu0 %v533_v56, %s2093_s1 }
 0x6a9   :  { %v638_v45 = vrot.slane %v606_v63, 2 }
 0x6ab   :  { %639 = vrot.lane.b32.xlu2 %v638_v45, %s2093_s1  ;;  %v1691_v45 = vld [vmem:[%s2526_s4 + $0x1] sm:$0x1] }
 0x705   :  { %v640_v47 = vpop.permute.xlu2 %639 }
 0x706   :  { %1684 = vmatmul.msk.f32.vlgmr.msra.gmra.mxu1 %vm163_vm1, %v640_v47  ;;  %1687 = vmatmul.msk.f32.vlgmr.msra.gmra.mxu2 %vm163_vm1, %v640_v47 }
 0x707   :  { %1159 = vmatpush.msra.mxu2 %v2247_v46 }
 0x709   :  { %1160 = vmatpush.msra.mxu2 %v2253_v48 }
 0x70b   :  { %1161 = vmatpush.msra.mxu2 %v2257_v50 }
 0x70d   :  { %1162 = vmatpush.msra.mxu2 %v2265_v52 }
 0x71a   :  { %v536_v0 = vpop.permute.xlu0 %535 }
 0x71b   :  { %538 = vst.msk [vmem:[#allocation3 + $0x1] sm:$0x1] %vm124_vm0, %v536_v0  ;;  %1683 = vmatmul.msk.f32.vlgmr.msra.gmra.mxu0 %vm163_vm1, %v536_v0 }
 0x71c   :  { %1059 = vmatpush.msra.mxu0 %v2195_v2  ;;  %v1685_v2 = vld [vmem:[%s2526_s4 + $0x1] sm:$0x1] }
 0x71e   :  { %1060 = vmatpush.msra.mxu0 %v2200_v4 }
 0x720   :  { %1061 = vmatpush.msra.mxu0 %v2204_v5 }
 0x722   :  { %1062 = vmatpush.msra.mxu0 %v2209_v11 }
 0x783   :  { %v660_v52 = vpop.f32.mrf.mxu1 }
 0x789   :  { %v728_v46 = vpop.f32.mrf.mxu2 }
 0x78a   :  { %v732_v1 = vrot.slane %v728_v46, 5 }
 0x78c   :  { %v734_v48 = vadd.f32 %v732_v1, %v2235_v21 }
 0x78e   :  { %1778 = vtanh.f32 %v734_v48  ;;  %v1688_v7 = vmul.f32 -1.442695, %v734_v48 }
 0x794   :  { %v1779_v50 = vpop.eup %1778 }
 0x795   :  { %760 = vrot.lane.b32.xlu1 %v1779_v50, %s2092_s25 }
 0x798   :  { %v634_v3 = vpop.f32.mrf.mxu0 }
 0x799   :  { %v661_v6 = vadd.f32 %v660_v52, %v634_v3 }
 0x79b   :  { %v664_v4 = vadd.f32 %v1685_v2, %v661_v6 }
 0x79d   :  { %1780 = vtanh.f32 %v664_v4  ;;  %v1686_v11 = vmul.f32 -1.442695, %v664_v4 }
 0x79f   :  { %1782 = vpow2.f32 %v1686_v11 }
 0x7a0   :  { %1784 = vpow2.f32 %v1688_v7 }
 0x7a3   :  { %v1781_v5 = vpop.eup %1780 }
 0x7a4   :  { %687 = vrot.lane.b32.xlu2 %v1781_v5, %s2092_s25 }
 0x7a5   :  { %v1783_v8 = vpop.eup %1782 }
 0x7a6   :  { %v668_v9 = vadd.f32 1.0, %v1783_v8  ;;  %v1785_v10 = vpop.eup %1784 }
 0x7a7   :  { %v738_v12 = vadd.f32 1.0, %v1785_v10 }
 0x7a8   :  { %1786 = vrcp.f32 %v668_v9  ;;  %v680_v20 = vand.u32 2147483648, %v668_v9  ;;  %vm674_vm9 = vweird.f32 %v668_v9  ;;  %v678_v23 = vand.u32 2147483647, %v668_v9 }
 0x7a9   :  { %1788 = vrcp.f32 %v738_v12  ;;  %v750_v31 = vand.u32 2147483648, %v738_v12  ;;  %vm744_vm13 = vweird.f32 %v738_v12  ;;  %v748_v32 = vand.u32 2147483647, %v738_v12 }
 0x7aa   :  { %v681_v25 = vor.u32 1.1754944e-38, %v680_v20  ;;  %vm679_vm11 = vcmp.eq.f32.partialorder %v678_v23, 8.507059e+37 }
 0x7ab   :  { %v751_v34 = vor.u32 1.1754944e-38, %v750_v31  ;;  %vm749_vm15 = vcmp.eq.f32.partialorder %v748_v32, 8.507059e+37 }
 0x7ae   :  { %v1787_v13 = vpop.eup %1786 }
 0x7af   :  { %v670_v14 = vmul.f32 %v1787_v13, %v668_v9  ;;  %v1789_v16 = vpop.eup %1788  ;;  %vm675_vm8 = vweird.f32 %v1787_v13 }
 0x7b0   :  { %v740_v18 = vmul.f32 %v1789_v16, %v738_v12  ;;  %vm676_vm10 = vmor %vm674_vm9, %vm675_vm8  ;;  %vm745_vm12 = vweird.f32 %v1789_v16 }
 0x7b1   :  { %v671_v15 = vsub.f32 1.0, %v670_v14  ;;  %vm746_vm14 = vmor %vm744_vm13, %vm745_vm12 }
 0x7b2   :  { %v741_v22 = vsub.f32 1.0, %v740_v18 }
 0x7b3   :  { %v672_v17 = vmul.f32 %v1787_v13, %v671_v15 }
 0x7b4   :  { %v742_v26 = vmul.f32 %v1789_v16, %v741_v22 }
 0x7b5   :  { %v673_v19 = vadd.f32 %v1787_v13, %v672_v17 }
 0x7b6   :  { %v743_v30 = vadd.f32 %v1789_v16, %v742_v26 }
 0x7b7   :  { %v677_v24 = vsel %vm676_vm10, %v1787_v13, %v673_v19 }
 0x7b8   :  { %v682_v28 = vsel %vm679_vm11, %v681_v25, %v677_v24  ;;  %v747_v33 = vsel %vm746_vm14, %v1789_v16, %v743_v30 }
 0x7b9   :  { %v752_v36 = vsel %vm749_vm15, %v751_v34, %v747_v33  ;;  %v685_v38 = vmul.f32 %v682_v28, %v2354_v58 }
 0x7ba   :  { %v758_v44 = vmul.f32 %v756_v41, %v752_v36 }
 0x7fe   :  { %v688_v27 = vpop.permute.xlu2 %687 }
 0x7ff   :  { %v690_v29 = vmul.f32 %v688_v27, %v682_v28 }
 0x801   :  { %692 = vrot.lane.b32.xlu1 %v690_v29, %s2093_s1 }
 0x807   :  { %v761_v35 = vpop.permute.xlu1 %760 }
 0x808   :  { %v763_v37 = vmul.f32 %v761_v35, %v752_v36 }
 0x80a   :  { %765 = vrot.lane.b32.xlu0 %v763_v37, %s2093_s1 }
 0x873   :  { %v693_v39 = vpop.permute.xlu1 %692 }
 0x874   :  { %v2385_v40 = vadd.f32 %v693_v39, %v685_v38 }
 0x876   :  { %1790 = vtanh.f32 %v2385_v40 }
 0x87c   :  { %v1791_v53 = vpop.eup %1790  ;;  %v766_v54 = vpop.permute.xlu0 %765 }
 0x87d   :  { %v2389_v55 = vadd.f32 %v766_v54, %v758_v44  ;;  %698 = vrot.lane.b32.xlu0 %v1791_v53, %s2092_s25 }
 0x87f   :  { %1792 = vtanh.f32 %v2389_v55  ;;  %v924_v33 = vrot.slane %v2389_v55, 7 }
 0x885   :  { %v1793_v57 = vpop.eup %1792 }
 0x886   :  { %771 = vrot.lane.b32.xlu2 %v1793_v57, %s2092_s25 }
 0x8e0   :  { %v772_v43 = vpop.permute.xlu2 %771 }
 0x8e1   :  { %v774_v58 = vmul.f32 %v772_v43, %v752_v36 }
 0x8e3   :  { %v806_v60 = vrot.slane %v774_v58, 3 }
 0x8e5   :  { %807 = vrot.lane.b32.xlu1 %v806_v60, %s2093_s1 }
 0x8ef   :  { %v699_v61 = vpop.permute.xlu0 %698 }
 0x8f0   :  { %v701_v42 = vmul.f32 %v699_v61, %v682_v28 }
 0x8f2   :  { %703 = vrot.lane.b32.xlu2 %v701_v42, %s2093_s1 }
 0x94c   :  { %v704_v59 = vpop.permute.xlu2 %703 }
 0x94d   :  { %706 = vst.msk [vmem:[#allocation3 + $0x2] sm:$0x1] %vm124_vm0, %v704_v59  ;;  %1689 = vmatmul.msk.f32.vlgmr.msra.gmra.mxu3 %vm163_vm1, %v704_v59 }
 0x957   :  { %v808_v62 = vpop.permute.xlu1 %807 }
 0x958   :  { %1690 = vmatmul.msk.f32.vlgmr.msrb.gmra.mxu0 %vm163_vm1, %v808_v62  ;;  %1693 = vmatmul.msk.f32.vlgmr.msrb.gmra.mxu1 %vm163_vm1, %v808_v62 }
 0x9d0   :  { %v802_v56 = vpop.f32.mrf.mxu3 }
 0x9d5   :  { %v828_v63 = vpop.f32.mrf.mxu0  ;;  %v896_v47 = vpop.f32.mrf.mxu1 }
 0x9d6   :  { %v829_v0 = vadd.f32 %v828_v63, %v802_v56  ;;  %v900_v46 = vrot.slane %v896_v47, 4  ;;  %v1697_v56 = vld [vmem:[%s2526_s4 + $0x1] sm:$0x1] }
 0x9d8   :  { %v832_v1 = vadd.f32 %v1691_v45, %v829_v0  ;;  %v902_v48 = vadd.f32 %v900_v46, %v2235_v21 }
 0x9da   :  { %1794 = vtanh.f32 %v832_v1  ;;  %v1692_v3 = vmul.f32 -1.442695, %v832_v1  ;;  %v1694_v2 = vmul.f32 -1.442695, %v902_v48 }
 0x9db   :  { %1796 = vtanh.f32 %v902_v48 }
 0x9dc   :  { %1798 = vpow2.f32 %v1692_v3 }
 0x9dd   :  { %1800 = vpow2.f32 %v1694_v2 }
 0x9e0   :  { %v1795_v50 = vpop.eup %1794 }
 0x9e1   :  { %v1797_v52 = vpop.eup %1796  ;;  %855 = vrot.lane.b32.xlu1 %v1795_v50, %s2092_s25 }
 0x9e2   :  { %928 = vrot.lane.b32.xlu0 %v1797_v52, %s2092_s25  ;;  %v1799_v6 = vpop.eup %1798 }
 0x9e3   :  { %v1801_v4 = vpop.eup %1800  ;;  %v836_v5 = vadd.f32 1.0, %v1799_v6 }
 0x9e4   :  { %v906_v11 = vadd.f32 1.0, %v1801_v4 }
 0x9e5   :  { %1802 = vrcp.f32 %v836_v5  ;;  %v848_v17 = vand.u32 2147483648, %v836_v5  ;;  %vm842_vm4 = vweird.f32 %v836_v5  ;;  %v846_v19 = vand.u32 2147483647, %v836_v5 }
 0x9e6   :  { %1804 = vrcp.f32 %v906_v11  ;;  %v918_v20 = vand.u32 2147483648, %v906_v11  ;;  %vm912_vm6 = vweird.f32 %v906_v11  ;;  %v916_v22 = vand.u32 2147483647, %v906_v11 }
 0x9e7   :  { %v849_v24 = vor.u32 1.1754944e-38, %v848_v17  ;;  %vm847_vm8 = vcmp.eq.f32.partialorder %v846_v19, 8.507059e+37 }
 0x9e8   :  { %v919_v26 = vor.u32 1.1754944e-38, %v918_v20  ;;  %vm917_vm9 = vcmp.eq.f32.partialorder %v916_v22, 8.507059e+37 }
 0x9eb   :  { %v1803_v7 = vpop.eup %1802 }
 0x9ec   :  { %v1805_v8 = vpop.eup %1804  ;;  %v838_v9 = vmul.f32 %v1803_v7, %v836_v5  ;;  %vm843_vm2 = vweird.f32 %v1803_v7 }
 0x9ed   :  { %v908_v10 = vmul.f32 %v1805_v8, %v906_v11  ;;  %vm913_vm3 = vweird.f32 %v1805_v8  ;;  %vm844_vm5 = vmor %vm842_vm4, %vm843_vm2 }
 0x9ee   :  { %v839_v12 = vsub.f32 1.0, %v838_v9  ;;  %vm914_vm7 = vmor %vm912_vm6, %vm913_vm3 }
 0x9ef   :  { %v909_v13 = vsub.f32 1.0, %v908_v10 }
 0x9f0   :  { %v840_v14 = vmul.f32 %v1803_v7, %v839_v12 }
 0x9f1   :  { %v910_v15 = vmul.f32 %v1805_v8, %v909_v13 }
 0x9f2   :  { %v841_v16 = vadd.f32 %v1803_v7, %v840_v14 }
 0x9f3   :  { %v911_v18 = vadd.f32 %v1805_v8, %v910_v15 }
 0x9f4   :  { %v845_v23 = vsel %vm844_vm5, %v1803_v7, %v841_v16 }
 0x9f5   :  { %v915_v25 = vsel %vm914_vm7, %v1805_v8, %v911_v18  ;;  %v850_v28 = vsel %vm847_vm8, %v849_v24, %v845_v23 }
 0x9f6   :  { %v920_v30 = vsel %vm917_vm9, %v919_v26, %v915_v25  ;;  %v853_v38 = vmul.f32 %v850_v28, %v2385_v40 }
 0x9f7   :  { %v926_v34 = vmul.f32 %v924_v33, %v920_v30 }
 0xa53   :  { %v856_v27 = vpop.permute.xlu1 %855 }
 0xa54   :  { %v858_v29 = vmul.f32 %v856_v27, %v850_v28  ;;  %v929_v31 = vpop.permute.xlu0 %928 }
 0xa55   :  { %v931_v32 = vmul.f32 %v929_v31, %v920_v30 }
 0xa56   :  { %860 = vrot.lane.b32.xlu0 %v858_v29, %s2093_s1 }
 0xa57   :  { %933 = vrot.lane.b32.xlu2 %v931_v32, %s2093_s1 }
 0xab1   :  { %v934_v35 = vpop.permute.xlu2 %933 }
 0xab2   :  { %v2409_v36 = vadd.f32 %v934_v35, %v926_v34 }
 0xab4   :  { %1806 = vtanh.f32 %v2409_v36 }
 0xaba   :  { %v1807_v37 = vpop.eup %1806 }
 0xabb   :  { %939 = vrot.lane.b32.xlu1 %v1807_v37, %s2092_s25 }
 0xac8   :  { %v861_v39 = vpop.permute.xlu0 %860 }
 0xac9   :  { %v2414_v41 = vadd.f32 %v861_v39, %v853_v38  ;;  %v1213_v38 = vld [vmem:[#allocation11 + $0x10] sm:$0xff]  ;;  %v1212_v39 = vld [vmem:[#allocation11 + $0x8] sm:$0xff] }
 0xacb   :  { %1808 = vtanh.f32 %v2414_v41 }
 0xad1   :  { %v1809_v44 = vpop.eup %1808 }
 0xad2   :  { %866 = vrot.lane.b32.xlu2 %v1809_v44, %s2092_s25  ;;  %v1211_v44 = vld [vmem:[#allocation11] sm:$0xff] }
 0xb2c   :  { %v867_v53 = vpop.permute.xlu2 %866 }
 0xb2d   :  { %v940_v54 = vpop.permute.xlu1 %939  ;;  %v869_v55 = vmul.f32 %v867_v53, %v850_v28  ;;  %v1092_v28 = vrot.slane %v2409_v36, 7  ;;  %v1214_v36 = vld [vmem:[#allocation11 + $0x18] sm:$0xff] }
 0xb2e   :  { %v942_v57 = vmul.f32 %v940_v54, %v920_v30  ;;  %1227 = vmatpush.msra.mxu3 %v1214_v36 }
 0xb2f   :  { %871 = vrot.lane.b32.xlu1 %v869_v55, %s2093_s1 }
 0xb30   :  { %v974_v43 = vrot.slane %v942_v57, 4  ;;  %1228 = vmatpush.msra.mxu3 %v1213_v38 }
 0xb32   :  { %975 = vrot.lane.b32.xlu0 %v974_v43, %s2093_s1  ;;  %1229 = vmatpush.msra.mxu3 %v1212_v39  ;;  %v1118_v43 = vld [vmem:[#allocation11 + $0x38] sm:$0xff] }
 0xb33   :  { %1133 = vmatpush.msra.mxu1 %v1118_v43  ;;  %1301 = vmatpush.msrb.mxu0 %v1118_v43 }
 0xb34   :  { %1230 = vmatpush.msra.mxu3 %v1211_v44 }
 0xba1   :  { %v872_v58 = vpop.permute.xlu1 %871 }
 0xba2   :  { %874 = vst.msk [vmem:[#allocation3 + $0x3] sm:$0x1] %vm124_vm0, %v872_v58  ;;  %1695 = vmatmul.msk.f32.vlgmr.msrb.gmra.mxu2 %vm163_vm1, %v872_v58  ;;  %v1117_v58 = vld [vmem:[#allocation11 + $0x30] sm:$0xff] }
 0xba3   :  { %1395 = vmatpush.msrb.mxu2 %v1214_v36  ;;  %1134 = vmatpush.msra.mxu1 %v1117_v58 }
 0xba4   :  { %v976_v40 = vpop.permute.xlu0 %975  ;;  %1302 = vmatpush.msrb.mxu0 %v1117_v58 }
 0xba5   :  { %1696 = vmatmul.msk.f32.vlgmr.msrb.gmra.mxu3 %vm163_vm1, %v976_v40  ;;  %1699 = vmatmul.msk.f32.vlgmr.msra.gmra.mxu0 %vm163_vm1, %v976_v40 }
 0xba6   :  { %1396 = vmatpush.msrb.mxu2 %v1213_v38  ;;  %1469 = vmatpush.msrb.mxu3 %v1118_v43  ;;  %v1282_v38 = vld [vmem:[#allocation9 + $0x38] sm:$0xff]  ;;  %v1279_v43 = vld [vmem:[#allocation9 + $0x20] sm:$0xff] }
 0xba7   :  { %1135 = vmatpush.msra.mxu1 %v2255_v49 }
 0xba8   :  { %1397 = vmatpush.msrb.mxu2 %v1212_v39  ;;  %1470 = vmatpush.msrb.mxu3 %v1117_v58  ;;  %v1281_v39 = vld [vmem:[#allocation9 + $0x30] sm:$0xff] }
 0xba9   :  { %1136 = vmatpush.msra.mxu1 %v2263_v51 }
 0xbaa   :  { %1398 = vmatpush.msrb.mxu2 %v1211_v44 }
 0xbab   :  { %1327 = vmatpush.msrb.mxu1 %v1282_v38 }
 0xbad   :  { %1328 = vmatpush.msrb.mxu1 %v1281_v39 }
 0xc22   :  { %v1064_v60 = vpop.f32.mrf.mxu0 }
 0xc23   :  { %v1068_v61 = vrot.slane %v1064_v60, 3 }
 0xc25   :  { %v1070_v42 = vadd.f32 %v1068_v61, %v2235_v21  ;;  %v970_v59 = vpop.f32.mrf.mxu2 }
 0xc27   :  { %1810 = vtanh.f32 %v1070_v42  ;;  %v1700_v46 = vmul.f32 -1.442695, %v1070_v42 }
 0xc28   :  { %v996_v62 = vpop.f32.mrf.mxu3 }
 0xc29   :  { %v997_v63 = vadd.f32 %v996_v62, %v970_v59 }
 0xc2b   :  { %v1000_v45 = vadd.f32 %v1697_v56, %v997_v63  ;;  %v1703_v56 = vld [vmem:[%s2526_s4 + $0x1] sm:$0x1] }
 0xc2d   :  { %v1811_v47 = vpop.eup %1810  ;;  %1812 = vtanh.f32 %v1000_v45  ;;  %v1698_v3 = vmul.f32 -1.442695, %v1000_v45 }
 0xc2e   :  { %1096 = vrot.lane.b32.xlu2 %v1811_v47, %s2092_s25  ;;  %1814 = vpow2.f32 %v1700_v46 }
 0xc33   :  { %v1813_v0 = vpop.eup %1812 }
 0xc34   :  { %1023 = vrot.lane.b32.xlu0 %v1813_v0, %s2092_s25  ;;  %v1815_v1 = vpop.eup %1814 }
 0xc35   :  { %v1074_v48 = vadd.f32 1.0, %v1815_v1 }
 0xc37   :  { %1816 = vrcp.f32 %v1074_v48  ;;  %v1086_v5 = vand.u32 2147483648, %v1074_v48  ;;  %vm1080_vm11 = vweird.f32 %v1074_v48  ;;  %v1084_v7 = vand.u32 2147483647, %v1074_v48 }
 0xc38   :  { %1818 = vpow2.f32 %v1698_v3 }
 0xc39   :  { %v1087_v10 = vor.u32 1.1754944e-38, %v1086_v5  ;;  %vm1085_vm13 = vcmp.eq.f32.partialorder %v1084_v7, 8.507059e+37 }
 0xc3d   :  { %v1817_v50 = vpop.eup %1816 }
 0xc3e   :  { %v1076_v52 = vmul.f32 %v1817_v50, %v1074_v48  ;;  %vm1081_vm10 = vweird.f32 %v1817_v50  ;;  %v1819_v11 = vpop.eup %1818 }
 0xc3f   :  { %vm1082_vm12 = vmor %vm1080_vm11, %vm1081_vm10  ;;  %v1004_v9 = vadd.f32 1.0, %v1819_v11 }
 0xc40   :  { %v1077_v2 = vsub.f32 1.0, %v1076_v52 }
 0xc41   :  { %1820 = vrcp.f32 %v1004_v9  ;;  %v1016_v20 = vand.u32 2147483648, %v1004_v9  ;;  %vm1010_vm15 = vweird.f32 %v1004_v9  ;;  %v1014_v22 = vand.u32 2147483647, %v1004_v9 }
 0xc42   :  { %v1078_v6 = vmul.f32 %v1817_v50, %v1077_v2 }
 0xc43   :  { %v1017_v24 = vor.u32 1.1754944e-38, %v1016_v20  ;;  %vm1015_vm3 = vcmp.eq.f32.partialorder %v1014_v22, 8.507059e+37 }
 0xc44   :  { %v1079_v4 = vadd.f32 %v1817_v50, %v1078_v6 }
 0xc46   :  { %v1083_v8 = vsel %vm1082_vm12, %v1817_v50, %v1079_v4 }
 0xc47   :  { %v1088_v13 = vsel %vm1085_vm13, %v1087_v10, %v1083_v8  ;;  %v1821_v15 = vpop.eup %1820 }
 0xc48   :  { %v1006_v16 = vmul.f32 %v1821_v15, %v1004_v9  ;;  %vm1011_vm14 = vweird.f32 %v1821_v15  ;;  %v1094_v29 = vmul.f32 %v1092_v28, %v1088_v13 }
 0xc49   :  { %vm1012_vm2 = vmor %vm1010_vm15, %vm1011_vm14 }
 0xc4a   :  { %v1007_v17 = vsub.f32 1.0, %v1006_v16 }
 0xc4c   :  { %v1008_v18 = vmul.f32 %v1821_v15, %v1007_v17 }
 0xc4e   :  { %v1009_v19 = vadd.f32 %v1821_v15, %v1008_v18 }
 0xc50   :  { %v1013_v23 = vsel %vm1012_vm2, %v1821_v15, %v1009_v19 }
 0xc51   :  { %v1018_v26 = vsel %vm1015_vm3, %v1017_v24, %v1013_v23 }
 0xc52   :  { %v1021_v32 = vmul.f32 %v1018_v26, %v2414_v41 }
 0xc88   :  { %v1097_v12 = vpop.permute.xlu2 %1096 }
 0xc89   :  { %v1099_v14 = vmul.f32 %v1097_v12, %v1088_v13 }
 0xc8b   :  { %1101 = vrot.lane.b32.xlu1 %v1099_v14, %s2093_s1 }
 0xca6   :  { %v1024_v25 = vpop.permute.xlu0 %1023 }
 0xca7   :  { %v1026_v27 = vmul.f32 %v1024_v25, %v1018_v26 }
 0xca9   :  { %1028 = vrot.lane.b32.xlu2 %v1026_v27, %s2093_s1 }
 0xcfd   :  { %v1102_v30 = vpop.permute.xlu1 %1101 }
 0xcfe   :  { %v2433_v31 = vadd.f32 %v1102_v30, %v1094_v29 }
 0xd00   :  { %1822 = vtanh.f32 %v2433_v31  ;;  %v1260_v27 = vrot.slane %v2433_v31, 7  ;;  %v1284_v31 = vld [vmem:[#allocation11 + $0x28] sm:$0xff] }
 0xd01   :  { %1303 = vmatpush.msrb.mxu0 %v1284_v31  ;;  %1471 = vmatpush.msrb.mxu3 %v1284_v31 }
 0xd03   :  { %v1029_v33 = vpop.permute.xlu2 %1028 }
 0xd04   :  { %v2437_v34 = vadd.f32 %v1029_v33, %v1021_v32 }
 0xd06   :  { %v1823_v35 = vpop.eup %1822  ;;  %1824 = vtanh.f32 %v2437_v34 }
 0xd07   :  { %1107 = vrot.lane.b32.xlu0 %v1823_v35, %s2092_s25 }
 0xd0c   :  { %v1825_v37 = vpop.eup %1824 }
 0xd0d   :  { %1034 = vrot.lane.b32.xlu1 %v1825_v37, %s2092_s25 }
 0xd79   :  { %v1108_v41 = vpop.permute.xlu0 %1107 }
 0xd7a   :  { %v1110_v53 = vmul.f32 %v1108_v41, %v1088_v13 }
 0xd7c   :  { %v1142_v54 = vrot.slane %v1110_v53, 5 }
 0xd7e   :  { %1143 = vrot.lane.b32.xlu2 %v1142_v54, %s2093_s1 }
 0xd7f   :  { %v1035_v55 = vpop.permute.xlu1 %1034 }
 0xd80   :  { %v1037_v57 = vmul.f32 %v1035_v55, %v1018_v26 }
 0xd82   :  { %1039 = vrot.lane.b32.xlu0 %v1037_v57, %s2093_s1  ;;  %v1280_v57 = vld [vmem:[#allocation9 + $0x28] sm:$0xff] }
 0xd83   :  { %1329 = vmatpush.msrb.mxu1 %v1280_v57 }
 0xd85   :  { %1330 = vmatpush.msrb.mxu1 %v1279_v43 }
 0xdd8   :  { %v1144_v40 = vpop.permute.xlu2 %1143 }
 0xdd9   :  { %1702 = vmatmul.msk.f32.vlgmr.msra.gmra.mxu2 %vm163_vm1, %v1144_v40  ;;  %1705 = vmatmul.msk.f32.vlgmr.msra.gmra.mxu3 %vm163_vm1, %v1144_v40 }
 0xdf4   :  { %v1040_v60 = vpop.permute.xlu0 %1039 }
 0xdf5   :  { %1042 = vst.msk [vmem:[#allocation3 + $0x4] sm:$0x1] %vm124_vm0, %v1040_v60  ;;  %1701 = vmatmul.msk.f32.vlgmr.msra.gmra.mxu1 %vm163_vm1, %v1040_v60 }
 0xe5c   :  { %v1232_v61 = vpop.f32.mrf.mxu3  ;;  %v1164_v49 = vpop.f32.mrf.mxu2 }
 0xe5d   :  { %v1236_v42 = vrot.slane %v1232_v61, 2 }
 0xe5f   :  { %v1238_v59 = vadd.f32 %v1236_v42, %v2235_v21  ;;  %v1709_v42 = vld [vmem:[%s2526_s4 + $0x1] sm:$0x1] }
 0xe61   :  { %1826 = vtanh.f32 %v1238_v59  ;;  %v1706_v46 = vmul.f32 -1.442695, %v1238_v59 }
 0xe67   :  { %v1827_v62 = vpop.eup %1826 }
 0xe68   :  { %1264 = vrot.lane.b32.xlu1 %v1827_v62, %s2092_s25 }
 0xe72   :  { %v1138_v51 = vpop.f32.mrf.mxu1 }
 0xe73   :  { %v1165_v63 = vadd.f32 %v1164_v49, %v1138_v51 }
 0xe75   :  { %v1168_v45 = vadd.f32 %v1703_v56, %v1165_v63 }
 0xe77   :  { %1828 = vtanh.f32 %v1168_v45  ;;  %v1704_v0 = vmul.f32 -1.442695, %v1168_v45 }
 0xe79   :  { %1830 = vpow2.f32 %v1704_v0 }
 0xe7a   :  { %1832 = vpow2.f32 %v1706_v46 }
 0xe7d   :  { %v1829_v47 = vpop.eup %1828 }
 0xe7e   :  { %1191 = vrot.lane.b32.xlu2 %v1829_v47, %s2092_s25 }
 0xe7f   :  { %v1831_v1 = vpop.eup %1830 }
 0xe80   :  { %v1833_v48 = vpop.eup %1832  ;;  %v1172_v50 = vadd.f32 1.0, %v1831_v1 }
 0xe81   :  { %v1242_v52 = vadd.f32 1.0, %v1833_v48 }
 0xe82   :  { %1834 = vrcp.f32 %v1172_v50  ;;  %v1184_v10 = vand.u32 2147483648, %v1172_v50  ;;  %vm1178_vm5 = vweird.f32 %v1172_v50  ;;  %v1182_v12 = vand.u32 2147483647, %v1172_v50 }
 0xe83   :  { %1836 = vrcp.f32 %v1242_v52  ;;  %v1254_v14 = vand.u32 2147483648, %v1242_v52  ;;  %vm1248_vm8 = vweird.f32 %v1242_v52  ;;  %v1252_v16 = vand.u32 2147483647, %v1242_v52 }
 0xe84   :  { %v1185_v17 = vor.u32 1.1754944e-38, %v1184_v10  ;;  %vm1183_vm10 = vcmp.eq.f32.partialorder %v1182_v12, 8.507059e+37 }
 0xe85   :  { %v1255_v22 = vor.u32 1.1754944e-38, %v1254_v14  ;;  %vm1253_vm11 = vcmp.eq.f32.partialorder %v1252_v16, 8.507059e+37 }
 0xe88   :  { %v1835_v3 = vpop.eup %1834 }
 0xe89   :  { %v1837_v2 = vpop.eup %1836  ;;  %v1174_v6 = vmul.f32 %v1835_v3, %v1172_v50  ;;  %vm1179_vm4 = vweird.f32 %v1835_v3 }
 0xe8a   :  { %v1244_v4 = vmul.f32 %v1837_v2, %v1242_v52  ;;  %vm1249_vm6 = vweird.f32 %v1837_v2  ;;  %vm1180_vm7 = vmor %vm1178_vm5, %vm1179_vm4 }
 0xe8b   :  { %v1175_v5 = vsub.f32 1.0, %v1174_v6  ;;  %vm1250_vm9 = vmor %vm1248_vm8, %vm1249_vm6 }
 0xe8c   :  { %v1245_v11 = vsub.f32 1.0, %v1244_v4 }
 0xe8d   :  { %v1176_v7 = vmul.f32 %v1835_v3, %v1175_v5 }
 0xe8e   :  { %v1246_v8 = vmul.f32 %v1837_v2, %v1245_v11 }
 0xe8f   :  { %v1177_v9 = vadd.f32 %v1835_v3, %v1176_v7 }
 0xe90   :  { %v1247_v13 = vadd.f32 %v1837_v2, %v1246_v8 }
 0xe91   :  { %v1181_v15 = vsel %vm1180_vm7, %v1835_v3, %v1177_v9 }
 0xe92   :  { %v1251_v18 = vsel %vm1250_vm9, %v1837_v2, %v1247_v13  ;;  %v1186_v20 = vsel %vm1183_vm10, %v1185_v17, %v1181_v15  ;;  %vm1583_vm10 = vcmask 261127  }
 0xe93   :  { %v1256_v24 = vsel %vm1253_vm11, %v1255_v22, %v1251_v18  ;;  %v1189_v28 = vmul.f32 %v1186_v20, %v2437_v34  ;;  %v1283_v34 = vld [vmem:[#allocation11 + $0x20] sm:$0xff] }
 0xe94   :  { %v1262_v32 = vmul.f32 %v1260_v27, %v1256_v24  ;;  %1304 = vmatpush.msrb.mxu0 %v1283_v34  ;;  %1472 = vmatpush.msrb.mxu3 %v1283_v34 }
 0xe96   :  { %1495 = vmatpush.msra.mxu0 %v1282_v38 }
 0xe98   :  { %1496 = vmatpush.msra.mxu0 %v1281_v39 }
 0xe9a   :  { %1497 = vmatpush.msra.mxu0 %v1280_v57 }
 0xe9c   :  { %1498 = vmatpush.msra.mxu0 %v1279_v43 }
 0xed8   :  { %v1192_v19 = vpop.permute.xlu2 %1191 }
 0xed9   :  { %v1194_v23 = vmul.f32 %v1192_v19, %v1186_v20 }
 0xeda   :  { %v1265_v25 = vpop.permute.xlu1 %1264 }
 0xedb   :  { %v1267_v26 = vmul.f32 %v1265_v25, %v1256_v24  ;;  %1196 = vrot.lane.b32.xlu1 %v1194_v23, %s2093_s1 }
 0xedd   :  { %1269 = vrot.lane.b32.xlu0 %v1267_v26, %s2093_s1 }
 0xf4d   :  { %v1197_v29 = vpop.permute.xlu1 %1196 }
 0xf4e   :  { %v2460_v30 = vadd.f32 %v1197_v29, %v1189_v28 }
 0xf4f   :  { %v1270_v33 = vpop.permute.xlu0 %1269 }
 0xf50   :  { %1838 = vtanh.f32 %v2460_v30  ;;  %v2463_v35 = vadd.f32 %v1270_v33, %v1262_v32 }
 0xf52   :  { %1840 = vtanh.f32 %v2463_v35  ;;  %v1428_v29 = vrot.slane %v2463_v35, 7 }
 0xf56   :  { %v1839_v37 = vpop.eup %1838 }
 0xf57   :  { %1202 = vrot.lane.b32.xlu0 %v1839_v37, %s2092_s25 }
 0xf58   :  { %v1841_v36 = vpop.eup %1840 }
 0xf59   :  { %1275 = vrot.lane.b32.xlu2 %v1841_v36, %s2092_s25 }
 0xfb3   :  { %v1276_v44 = vpop.permute.xlu2 %1275 }
 0xfb4   :  { %v1278_v41 = vmul.f32 %v1276_v44, %v1256_v24 }
 0xfb6   :  { %v1310_v53 = vrot.slane %v1278_v41, 6 }
 0xfb8   :  { %1311 = vrot.lane.b32.xlu1 %v1310_v53, %s2093_s1 }
 0xfc9   :  { %v1203_v54 = vpop.permute.xlu0 %1202 }
 0xfca   :  { %v1205_v55 = vmul.f32 %v1203_v54, %v1186_v20  ;;  %v1715_v54 = vld [vmem:[%s2526_s4 + $0x1] sm:$0x1]  ;;  %s2094_s4 = smov 96  }
 0xfcc   :  { %1207 = vrot.lane.b32.xlu2 %v1205_v55, %s2093_s1 }
0x1026   :  { %v1208_v58 = vpop.permute.xlu2 %1207 }
0x1027   :  { %1210 = vst.msk [vmem:[#allocation3 + $0x5] sm:$0x1] %vm124_vm0, %v1208_v58  ;;  %1707 = vmatmul.msk.f32.vlgmr.msrb.gmra.mxu0 %vm163_vm1, %v1208_v58 }
0x102a   :  { %v1312_v40 = vpop.permute.xlu1 %1311 }
0x102b   :  { %1708 = vmatmul.msk.f32.vlgmr.msrb.gmra.mxu1 %vm163_vm1, %v1312_v40  ;;  %1711 = vmatmul.msk.f32.vlgmr.msrb.gmra.mxu2 %vm163_vm1, %v1312_v40 }
0x10a4   :  { %v1306_v60 = vpop.f32.mrf.mxu0 }
0x10a8   :  { %v1332_v61 = vpop.f32.mrf.mxu1 }
0x10a9   :  { %v1333_v59 = vadd.f32 %v1332_v61, %v1306_v60 }
0x10ab   :  { %v1336_v62 = vadd.f32 %v1709_v42, %v1333_v59 }
0x10ad   :  { %1842 = vtanh.f32 %v1336_v62  ;;  %v1710_v47 = vmul.f32 -1.442695, %v1336_v62 }
0x10ae   :  { %v1400_v49 = vpop.f32.mrf.mxu2 }
0x10af   :  { %v1404_v51 = vrot.slane %v1400_v49, 1 }
0x10b1   :  { %v1406_v56 = vadd.f32 %v1404_v51, %v2235_v21 }
0x10b3   :  { %v1843_v63 = vpop.eup %1842  ;;  %1844 = vtanh.f32 %v1406_v56  ;;  %v1712_v0 = vmul.f32 -1.442695, %v1406_v56 }
0x10b4   :  { %1359 = vrot.lane.b32.xlu0 %v1843_v63, %s2092_s25  ;;  %1846 = vpow2.f32 %v1710_v47 }
0x10b5   :  { %1848 = vpow2.f32 %v1712_v0 }
0x10b9   :  { %v1845_v45 = vpop.eup %1844 }
0x10ba   :  { %1432 = vrot.lane.b32.xlu1 %v1845_v45, %s2092_s25  ;;  %v1847_v46 = vpop.eup %1846 }
0x10bb   :  { %v1340_v1 = vadd.f32 1.0, %v1847_v46  ;;  %v1849_v48 = vpop.eup %1848 }
0x10bc   :  { %v1410_v50 = vadd.f32 1.0, %v1849_v48 }
0x10bd   :  { %1850 = vrcp.f32 %v1340_v1  ;;  %v1352_v7 = vand.u32 2147483648, %v1340_v1  ;;  %vm1346_vm13 = vweird.f32 %v1340_v1  ;;  %v1350_v8 = vand.u32 2147483647, %v1340_v1 }
0x10be   :  { %1852 = vrcp.f32 %v1410_v50  ;;  %v1422_v16 = vand.u32 2147483648, %v1410_v50  ;;  %vm1416_vm3 = vweird.f32 %v1410_v50  ;;  %v1420_v18 = vand.u32 2147483647, %v1410_v50 }
0x10bf   :  { %v1353_v12 = vor.u32 1.1754944e-38, %v1352_v7  ;;  %vm1351_vm15 = vcmp.eq.f32.partialorder %v1350_v8, 8.507059e+37  ;;  %v1548_v7 = vld [vmem:[#allocation14] sm:$0xff] }
0x10c0   :  { %v1423_v20 = vor.u32 1.1754944e-38, %v1422_v16  ;;  %vm1421_vm5 = vcmp.eq.f32.partialorder %v1420_v18, 8.507059e+37 }
0x10c3   :  { %v1851_v52 = vpop.eup %1850 }
0x10c4   :  { %v1342_v3 = vmul.f32 %v1851_v52, %v1340_v1  ;;  %v1853_v21 = vpop.eup %1852  ;;  %vm1347_vm12 = vweird.f32 %v1851_v52 }
0x10c5   :  { %v1412_v6 = vmul.f32 %v1853_v21, %v1410_v50  ;;  %vm1348_vm14 = vmor %vm1346_vm13, %vm1347_vm12  ;;  %vm1417_vm2 = vweird.f32 %v1853_v21 }
0x10c6   :  { %v1343_v2 = vsub.f32 1.0, %v1342_v3  ;;  %vm1418_vm4 = vmor %vm1416_vm3, %vm1417_vm2 }
0x10c7   :  { %v1413_v5 = vsub.f32 1.0, %v1412_v6 }
0x10c8   :  { %v1344_v4 = vmul.f32 %v1851_v52, %v1343_v2 }
0x10c9   :  { %v1414_v9 = vmul.f32 %v1853_v21, %v1413_v5  ;;  %v1550_v5 = vld [vmem:[#allocation14 + $0x10] sm:$0xff] }
0x10ca   :  { %v1345_v11 = vadd.f32 %v1851_v52, %v1344_v4  ;;  %v1551_v4 = vld [vmem:[#allocation14 + $0x18] sm:$0xff] }
0x10cb   :  { %v1415_v13 = vadd.f32 %v1853_v21, %v1414_v9  ;;  %1571 = vmatpush.msra.mxu1 %v1551_v4 }
0x10cc   :  { %v1349_v10 = vsel %vm1348_vm14, %v1851_v52, %v1345_v11  ;;  %v1549_v11 = vld [vmem:[#allocation14 + $0x8] sm:$0xff] }
0x10cd   :  { %v1354_v15 = vsel %vm1351_vm15, %v1353_v12, %v1349_v10  ;;  %v1419_v19 = vsel %vm1418_vm4, %v1853_v21, %v1415_v13  ;;  %1572 = vmatpush.msra.mxu1 %v1550_v5  ;;  %v1737_v12 = vld [vmem:[%s2530_s8] ss:$0 sm:$0xff] }
0x10ce   :  { %v1424_v23 = vsel %vm1421_vm5, %v1423_v20, %v1419_v19  ;;  %v1357_v25 = vmul.f32 %v1354_v15, %v2460_v30 }
0x10cf   :  { %v1430_v32 = vmul.f32 %v1428_v29, %v1424_v23  ;;  %1573 = vmatpush.msra.mxu1 %v1549_v11 }
0x10d1   :  { %1574 = vmatpush.msra.mxu1 %v1548_v7 }
0x1126   :  { %v1360_v14 = vpop.permute.xlu0 %1359 }
0x1127   :  { %v1362_v17 = vmul.f32 %v1360_v14, %v1354_v15 }
0x1129   :  { %1364 = vrot.lane.b32.xlu2 %v1362_v17, %s2093_s1 }
0x112c   :  { %v1433_v22 = vpop.permute.xlu1 %1432 }
0x112d   :  { %v1435_v24 = vmul.f32 %v1433_v22, %v1424_v23 }
0x112f   :  { %1437 = vrot.lane.b32.xlu0 %v1435_v24, %s2093_s1 }
0x1183   :  { %v1365_v26 = vpop.permute.xlu2 %1364 }
0x1184   :  { %v1367_v27 = vadd.f32 %v1365_v26, %v1357_v25 }
0x1186   :  { %1854 = vtanh.f32 %v1367_v27 }
0x118c   :  { %v1855_v28 = vpop.eup %1854 }
0x118d   :  { %1370 = vrot.lane.b32.xlu1 %v1855_v28, %s2092_s25 }
0x11a1   :  { %v1438_v33 = vpop.permute.xlu0 %1437 }
0x11a2   :  { %v1440_v37 = vadd.f32 %v1438_v33, %v1430_v32 }
0x11a4   :  { %1856 = vtanh.f32 %v1440_v37 }
0x11aa   :  { %v1857_v36 = vpop.eup %1856 }
0x11ab   :  { %1443 = vrot.lane.b32.xlu2 %v1857_v36, %s2092_s25 }
0x11ff   :  { %v1371_v31 = vpop.permute.xlu1 %1370 }
0x1200   :  { %v1373_v38 = vmul.f32 %v1371_v31, %v1354_v15 }
0x1202   :  { %1375 = vrot.lane.b32.xlu0 %v1373_v38, %s2093_s1 }
0x1205   :  { %v1444_v30 = vpop.permute.xlu2 %1443 }
0x1206   :  { %v1446_v34 = vmul.f32 %v1444_v30, %v1424_v23 }
0x1208   :  { %v1478_v39 = vrot.slane %v1446_v34, 7 }
0x120a   :  { %1479 = vrot.lane.b32.xlu1 %v1478_v39, %s2093_s1 }
0x1274   :  { %v1376_v44 = vpop.permute.xlu0 %1375 }
0x1275   :  { %1378 = vst.msk [vmem:[#allocation3 + $0x6] sm:$0x1] %vm124_vm0, %v1376_v44  ;;  %1713 = vmatmul.msk.f32.vlgmr.msrb.gmra.mxu3 %vm163_vm1, %v1376_v44 }
0x127c   :  { %v1480_v35 = vpop.permute.xlu1 %1479 }
0x127d   :  { %1714 = vmatmul.msk.f32.vlgmr.msra.gmra.mxu0 %vm163_vm1, %v1480_v35 }
0x12f8   :  { %v1474_v41 = vpop.f32.mrf.mxu3 }
0x12fa   :  { %v1500_v53 = vpop.f32.mrf.mxu0 }
0x12fb   :  { %v1501_v55 = vadd.f32 %v1500_v53, %v1474_v41 }
0x12fd   :  { %v1504_v57 = vadd.f32 %v1715_v54, %v1501_v55 }
0x12ff   :  { %1858 = vtanh.f32 %v1504_v57  ;;  %v1716_v58 = vmul.f32 -1.442695, %v1504_v57 }
0x1301   :  { %1860 = vpow2.f32 %v1716_v58 }
0x1305   :  { %v1859_v43 = vpop.eup %1858 }
0x1306   :  { %1527 = vrot.lane.b32.xlu2 %v1859_v43, %s2092_s25 }
0x1307   :  { %v1861_v40 = vpop.eup %1860 }
0x1308   :  { %v1508_v60 = vadd.f32 1.0, %v1861_v40 }
0x130a   :  { %1862 = vrcp.f32 %v1508_v60  ;;  %v1520_v51 = vand.u32 2147483648, %v1508_v60  ;;  %vm1514_vm7 = vweird.f32 %v1508_v60  ;;  %v1518_v56 = vand.u32 2147483647, %v1508_v60 }
0x130c   :  { %v1521_v45 = vor.u32 1.1754944e-38, %v1520_v51  ;;  %vm1519_vm9 = vcmp.eq.f32.partialorder %v1518_v56, 8.507059e+37 }
0x1310   :  { %v1863_v61 = vpop.eup %1862 }
0x1311   :  { %v1510_v42 = vmul.f32 %v1863_v61, %v1508_v60  ;;  %vm1515_vm6 = vweird.f32 %v1863_v61 }
0x1312   :  { %vm1516_vm8 = vmor %vm1514_vm7, %vm1515_vm6 }
0x1313   :  { %v1511_v59 = vsub.f32 1.0, %v1510_v42 }
0x1315   :  { %v1512_v62 = vmul.f32 %v1863_v61, %v1511_v59 }
0x1317   :  { %v1513_v49 = vadd.f32 %v1863_v61, %v1512_v62 }
0x1319   :  { %v1517_v63 = vsel %vm1516_vm8, %v1863_v61, %v1513_v49 }
0x131a   :  { %v1522_v0 = vsel %vm1519_vm9, %v1521_v45, %v1517_v63 }
0x131b   :  { %v1525_v1 = vmul.f32 %v1522_v0, %v1367_v27 }
0x1360   :  { %v1528_v47 = vpop.permute.xlu2 %1527 }
0x1361   :  { %v1530_v46 = vmul.f32 %v1528_v47, %v1522_v0 }
0x1363   :  { %1532 = vrot.lane.b32.xlu0 %v1530_v46, %s2093_s1 }
0x136b   :  { %1580 = vrot.lane.b32.xlu0 %v1446_v34, %s2093_s1 }
0x13d5   :  { %v1533_v48 = vpop.permute.xlu0 %1532 }
0x13d6   :  { %v1535_v50 = vadd.f32 %v1533_v48, %v1525_v1 }
0x13d8   :  { %1864 = vtanh.f32 %v1535_v50 }
0x13dd   :  { %v1581_v52 = vpop.permute.xlu0 %1580 }
0x13de   :  { %v1865_v3 = vpop.eup %1864  ;;  %1584 = vst.msk [vmem:[#allocation16 - $0x7] sm:$0x80] %vm1583_vm10, %v1581_v52 }
0x13df   :  { %1538 = vrot.lane.b32.xlu1 %v1865_v3, %s2092_s25  ;;  %s1615_s25 = sshll.u32 %s2532_s10, 4  ;;  %s1616_s25 = int_to_ptr.hbm [resolvable:$true] %s1615_s25 }
0x13e7   :  { %1586 = vrot.lane.b32.xlu1 %v1440_v37, %s2094_s4 }
0x1451   :  { %v1539_v21 = vpop.permute.xlu1 %1538 }
0x1452   :  { %v1541_v2 = vmul.f32 %v1539_v21, %v1522_v0 }
0x1454   :  { %1543 = vrot.lane.b32.xlu2 %v1541_v2, %s2093_s1  ;;  %s2096_s1 = smov [#allocation18]  }
0x1455   :  { %s1626_s0 = sshll.u32 %s2096_s1, 4  ;;  %s1627_s0 = int_to_ptr.vmem [resolvable:$true] %s1626_s0 }
0x1459   :  { %v1587_v6 = vpop.permute.xlu1 %1586 }
0x145a   :  { %1589 = vst.msk [vmem:[#allocation18 - $0x7] sm:$0x80] %vm1583_vm10, %v1587_v6 }
0x145c   :  { %1593 = vrot.lane.b32.xlu2 %v1535_v50, %s2094_s4 }
0x14ae   :  { %v1544_v8 = vpop.permute.xlu2 %1543 }
0x14af   :  { %1546 = vst.msk [vmem:[#allocation3 + $0x7] sm:$0x1] %vm124_vm0, %v1544_v8 }
0x14b0   :  { %1591 = vst.msk [vmem:[#allocation16 + $0x1] sm:$0x1] %vm124_vm0, %v1544_v8 }
0x14b1   :  { %1621 = dma.vmem_to_hbm [thread:$0]  %s1614_s22, 32, %s1616_s25, [#allocation17], %s2087_s13, %s2087_s13, %s2088_s2  }
0x14b6   :  { %v1594_v9 = vpop.permute.xlu2 %1593  ;;  %v1547_v10 = vld [vmem:[#allocation3] sm:$0xff] }
0x14b7   :  { %1597 = vst.msk [vmem:[#allocation18 + $0x1] sm:$0x1] %vm124_vm0, %v1594_v9  ;;  %1717 = vmatmul.msk.f32.vlgmr.msra.gmra.mxu1 %vm163_vm1, %v1547_v10 }
0x14b8   :  { %1634 = dma.vmem_to_hbm [thread:$0]  %s1627_s0, 32, %s1629_s7, [#allocation17], %s2087_s13, %s2087_s13, %s2088_s2  }
0x1534   :  { %v1576_v13 = vpop.f32.mrf.mxu1 }
0x1535   :  { %v1577_v14 = vadd.f32 %v1737_v12, %v1576_v13 }
0x1537   :  { %1579 = vst.msk [vmem:[#allocation15] sm:$0xff] %vm163_vm1, %v1577_v14 }
0x1538   :  { %1608 = dma.vmem_to_hbm [thread:$0]  %s1604_s30, 128, %s1606_s29, [#allocation8]  }
0x1539   :  { %2078 = dma.done.wait [#allocation8], 128  }
0x153a   :  { %2079 = vsyncadd [#allocation8], 4294967168 }
0x153b   :  { %2080 = dma.done.wait [#allocation17], 64  }
0x153c   :  { %2081 = vsyncadd [#allocation17], 4294967232 }
0x153d   :  { %1647 = vsyncpa [#allocation7], 1 }
0x153e   :  { %1648 = vsyncpa [#allocation10], 1 }
0x153f   :  { %1649 = vsyncpa [#allocation13], 1 }
0x1540   :  { %1650 = vsyncpa [#allocation8], 1 }
0x1541   :  { %1651 = vsyncpa [#allocation17], 1 }

</bundles_post_ra>
